<compile_context>
chip_gen: v7x
topology: tpu7x:2x2x1
jax: 0.10.0
libtpu: 0.0.40
codegen_flags: <defaults>
</compile_context>

<pallas_src>
import math

import jax
import jax.numpy as jnp
from jax import lax
from jax.experimental import pallas as pl
from jax.experimental.pallas import tpu as pltpu

N_SIDES = 4
OUT_PAD = 128          # lane-dense output width; sliced back to N_SIDES in the wrapper
EPS = 1e-5             # PyTorch LayerNorm default eps
_NEG_BIG = -1e9        # bias for padded prediction-head columns -> softmax prob == 0

_LAYER_WEIGHTS = [
    "ln_w", "ln_b",
    "sa_v_w", "sa_v_b", "sa_o_w", "sa_o_b",
    "ca_q_w", "ca_q_b", "ca_k_w", "ca_k_b",
    "ca_v_w", "ca_v_b", "ca_o_w", "ca_o_b",
    "ff1_w", "ff1_b", "ff2_w", "ff2_b",
]
_HEAD_WEIGHTS = ["h_ln_w", "h_ln_b", "p_w", "p_b"]
_BF16_WEIGHTS = ["sa_v_w", "sa_o_w", "ca_q_w", "ca_k_w", "ca_v_w", "ca_o_w",
                 "ff1_w", "ff2_w"]


def _round_up(x, m):
    return (x + m - 1) // m * m


def _layernorm(x, w, b):
    mu = jnp.mean(x, axis=-1, keepdims=True)
    xc = x - mu
    var = jnp.mean(xc * xc, axis=-1, keepdims=True)
    return xc * lax.rsqrt(var + EPS) * w + b


def make_head_masks(E, n_heads):
    """Per-head block masks (bf16).  1/sqrt(head_dim) is folded into hmask so the
    logits matmul needs no extra VPU scale."""
    hd = E // n_heads
    scale = 1.0 / math.sqrt(hd)
    head_of_dim = jnp.arange(E, dtype=jnp.int32) // hd
    heads = jnp.arange(n_heads, dtype=jnp.int32)
    hmask = ((head_of_dim[:, None] == heads[None, :]).astype(jnp.float32)
             * scale).astype(jnp.bfloat16)                                  # [E, H]
    hmaskT = (heads[:, None] == head_of_dim[None, :]).astype(jnp.bfloat16)  # [H, E]
    return hmask, hmaskT


def select_side_kernel(
    query_ref, tiles_ref, hmask_ref, hmaskT_ref,
    ln_w_ref, ln_b_ref,
    sa_v_w_ref, sa_v_b_ref, sa_o_w_ref, sa_o_b_ref,
    ca_q_w_ref, ca_q_b_ref, ca_k_w_ref, ca_k_b_ref,
    ca_v_w_ref, ca_v_b_ref, ca_o_w_ref, ca_o_b_ref,
    ff1_w_ref, ff1_b_ref, ff2_w_ref, ff2_b_ref,
    h_ln_w_ref, h_ln_b_ref, p_w_ref, p_b_ref,
    out_ref,
    x_ref,
):
    layer = pl.program_id(1)
    n_layers = pl.num_programs(1)

    BM, E = x_ref.shape
    T = tiles_ref.shape[0]
    H = hmask_ref.shape[-1]

    # Initialize the residual stream for this batch block on its first layer step.
    @pl.when(layer == 0)
    def _():
        x_ref[...] = query_ref[...].astype(jnp.float32)

    def mm(a, w_ref, b_ref):
        # bf16 operands on the MXU, f32 accumulation; bias added in f32.
        return (jnp.dot(a.astype(jnp.bfloat16), w_ref[0],
                        preferred_element_type=jnp.float32) + b_ref[0])

    x = x_ref[...]                                # [BM, E] f32 residual stream
    ln_w = ln_w_ref[0]                            # [3, E]
    ln_b = ln_b_ref[0]

    # ---- self-attention (norm_first).  tgt length == 1 -> softmax over a single
    # key is 1, so attention == V projection -> out projection (exact at inference).
    x1 = _layernorm(x, ln_w[0:1], ln_b[0:1])
    x = x + mm(mm(x1, sa_v_w_ref, sa_v_b_ref), sa_o_w_ref, sa_o_b_ref)

    # ---- cross-attention over the tiles -------------------------------------
    x2 = _layernorm(x, ln_w[1:2], ln_b[1:2])
    q = mm(x2, ca_q_w_ref, ca_q_b_ref)                            # [BM, E] f32

    tiles2d = tiles_ref[...].reshape(T * BM, E)                   # bf16 (DMA'd bf16)
    k = mm(tiles2d, ca_k_w_ref, ca_k_b_ref)                       # [T*BM, E] f32
    v = mm(tiles2d, ca_v_w_ref, ca_v_b_ref)                       # [T*BM, E] f32

    qk = k.reshape(T, BM, E) * q[None, :, :]                      # f32 products
    # Per-head logits via bf16 MXU matmul; 1/sqrt(hd) is folded into hmask.
    scores = jnp.dot(qk.reshape(T * BM, E).astype(jnp.bfloat16), hmask_ref[...],
                     preferred_element_type=jnp.float32).reshape(T, BM, H)
    scores = scores - jnp.max(scores, axis=0, keepdims=True)      # softmax over tiles
    w_attn = jnp.exp(scores)
    w_attn = w_attn / jnp.sum(w_attn, axis=0, keepdims=True)      # exact divide
    w_full = jnp.dot(w_attn.reshape(T * BM, H).astype(jnp.bfloat16), hmaskT_ref[...],
                     preferred_element_type=jnp.float32)          # [T*BM, E]
    attn = jnp.sum(w_full.reshape(T, BM, E) * v.reshape(T, BM, E), axis=0)  # [BM, E]
    x = x + mm(attn, ca_o_w_ref, ca_o_b_ref)

    # ---- feed-forward --------------------------------------------------------
    x3 = _layernorm(x, ln_w[2:3], ln_b[2:3])
    h1 = jnp.maximum(mm(x3, ff1_w_ref, ff1_b_ref), 0.0)           # ReLU
    x = x + mm(h1, ff2_w_ref, ff2_b_ref)

    x_ref[...] = x

    # ---- prediction head: LayerNorm -> Linear -> Softmax (last layer step) ---
    @pl.when(layer == n_layers - 1)
    def _():
        y = _layernorm(x, h_ln_w_ref[...], h_ln_b_ref[...])
        logits = (jnp.dot(y.astype(jnp.bfloat16), p_w_ref[...],
                          preferred_element_type=jnp.float32) + p_b_ref[...])
        logits = logits - jnp.max(logits, axis=-1, keepdims=True)
        e = jnp.exp(logits)
        out_ref[...] = e * pl.reciprocal(jnp.sum(e, axis=-1, keepdims=True),
                                         approx=True)


def prepare_params(P):
    """Pad Dff to a multiple of 128 (exact through ReLU), cast matmul weights to bf16,
    pad the prediction head to a lane-dense width."""
    out = dict(P)
    # Lane-align Dff: zero-pad ff1 columns / ff1 bias / ff2 rows (padded hidden units
    # are ReLU(0 + 0) = 0 and contribute nothing — exact).
    Dff = P["ff1_w"].shape[-1]
    Dff_pad = _round_up(Dff, 128)
    if Dff_pad != Dff:
        pad = Dff_pad - Dff
        out["ff1_w"] = jnp.pad(P["ff1_w"], ((0, 0), (0, 0), (0, pad)))
        out["ff1_b"] = jnp.pad(P["ff1_b"], ((0, 0), (0, 0), (0, pad)))
        out["ff2_w"] = jnp.pad(P["ff2_w"], ((0, 0), (0, pad), (0, 0)))
    for name in _BF16_WEIGHTS:
        out[name] = out[name].astype(jnp.bfloat16)
    E = P["p_w"].shape[0]
    p_w = jnp.zeros((E, OUT_PAD), jnp.float32).at[:, :N_SIDES].set(P["p_w"])
    p_b = jnp.full((1, OUT_PAD), _NEG_BIG, jnp.float32).at[:, :N_SIDES].set(P["p_b"])
    out["p_w"] = p_w.astype(jnp.bfloat16)
    out["p_b"] = p_b
    return out


def select_side_pallas(query, tiles_tbe, params, *, n_heads, n_layers,
                       block_b=256, weight_buffers=None):
    """query: [B, E] f32; tiles_tbe: [T, B, E] (PyTorch layout — no wrapper transpose).
    params: output of prepare_params().  Returns [B, N_SIDES] f32.
    weight_buffers: optional 3 for v5e/v6e if profiling shows exposed weight DMA."""
    B, E = query.shape
    T = tiles_tbe.shape[0]
    assert E % n_heads == 0, "embedding_dim must be divisible by n_heads"
    assert tiles_tbe.shape[1] == B and tiles_tbe.shape[2] == E

    query = query.astype(jnp.float32)
    tiles_tbe = tiles_tbe.astype(jnp.bfloat16)     # largest per-block input: bf16 DMA
    hmask, hmaskT = make_head_masks(E, n_heads)    # bf16, scale folded

    Dff = params["ff1_w"].shape[-1]

    # ---- batch block size ----------------------------------------------------
    bm = max(8, min(_round_up(block_b, 8), _round_up(B, 8)))
    # v7x: the "parallel" batch axis feeds 2 TensorCores — keep >= 2 blocks if possible.
    if B > 8 and _round_up(B, bm) // bm < 2:
        bm = max(8, _round_up((B + 1) // 2, 8))

    layer_w_bytes = sum((int(params[n].size) // n_layers) * params[n].dtype.itemsize
                        for n in _LAYER_WEIGHTS)
    head_w_bytes = sum(int(params[n].size) * params[n].dtype.itemsize
                       for n in _HEAD_WEIGHTS)
    n_wbuf = 2 if weight_buffers is None else int(weight_buffers)

    def vmem_needed(bm_):
        io = (2 * bm_ * E * 4              # query block (double-buffered)
              + 2 * T * bm_ * E * 2        # tiles slab (bf16, double-buffered)
              + n_wbuf * layer_w_bytes     # per-layer weights (multi-buffered)
              + head_w_bytes
              + 2 * bm_ * OUT_PAD * 4)     # output block
        temps = (4 * T * bm_ * E * 4       # k, v, qk, w_full f32 temporaries
                 + 2 * T * bm_ * E * 2     # bf16 copies fed to the mask matmuls
                 + 2 * bm_ * Dff * 4)      # ffn hidden
        masks = (int(hmask.size) + int(hmaskT.size)) * 2
        scratch = bm_ * E * 4              # residual-stream accumulator
        return io + temps + masks + scratch

    try:
        vmem_cap = int(pltpu.get_tpu_info().vmem_capacity_bytes)
    except Exception:
        vmem_cap = 64 << 20                # assume smallest per-TC VMEM (v7x)
    budget = int(0.75 * vmem_cap)          # headroom for Mosaic internal scratch
    while bm > 8 and vmem_needed(bm) > budget:
        bm = max(8, _round_up(bm // 2, 8))

    B_pad = _round_up(B, bm)
    if B_pad != B:
        query = jnp.pad(query, ((0, B_pad - B), (0, 0)))
        tiles_tbe = jnp.pad(tiles_tbe, ((0, 0), (0, B_pad - B), (0, 0)))
    n_blocks = B_pad // bm

    weights = [params[n] for n in _LAYER_WEIGHTS + _HEAD_WEIGHTS]

    def layer_spec(a):   # one layer's slice resident at a time, indexed by grid axis 1
        shape = (1,) + tuple(a.shape[1:])
        if weight_buffers is None:
            return pl.BlockSpec(shape, lambda b, l: (l, 0, 0))
        return pl.BlockSpec(shape, lambda b, l: (l, 0, 0),
                            pipeline_mode=pl.Buffered(n_wbuf))

    def const_spec(a):   # small 2-D constant, always resident
        return pl.BlockSpec(tuple(a.shape), lambda b, l: (0, 0))

    in_specs = (
        [pl.BlockSpec((bm, E), lambda b, l: (b, 0)),          # query block
         pl.BlockSpec((T, bm, E), lambda b, l: (0, b, 0)),    # tiles block ([T, B, E])
         const_spec(hmask), const_spec(hmaskT)]
        + [layer_spec(params[n]) for n in _LAYER_WEIGHTS]
        + [const_spec(params[n]) for n in _HEAD_WEIGHTS]
    )

    # Advisory cost estimate; weights are re-read from HBM once per batch block.
    flops = int(B_pad * n_layers * (8 * E * E + 4 * T * E * E + 4 * E * Dff
                                    + 4 * T * E * n_heads)
                + 2 * B_pad * E * OUT_PAD)
    transcendentals = int(B_pad * (n_layers * (T * n_heads + 3) + OUT_PAD + 1))
    bytes_accessed = int(
        int(query.size) * 4 + int(tiles_tbe.size) * 2
        + (int(hmask.size) + int(hmaskT.size)) * 2
        + layer_w_bytes * n_layers * n_blocks
        + head_w_bytes
        + B_pad * OUT_PAD * 4)

    vmem_limit = int(min(budget, max(vmem_needed(bm) + (4 << 20), 16 << 20)))

    out = pl.pallas_call(
        select_side_kernel,
        out_shape=jax.ShapeDtypeStruct((B_pad, OUT_PAD), jnp.float32),
        grid_spec=pltpu.PrefetchScalarGridSpec(
            num_scalar_prefetch=0,
            grid=(n_blocks, n_layers),
            in_specs=in_specs,
            out_specs=pl.BlockSpec((bm, OUT_PAD), lambda b, l: (b, 0)),
            scratch_shapes=[pltpu.VMEM((bm, E), jnp.float32)],
        ),
        compiler_params=pltpu.CompilerParams(
            dimension_semantics=("parallel", "arbitrary"),
            vmem_limit_bytes=vmem_limit),
        cost_estimate=pl.CostEstimate(flops=flops, transcendentals=transcendentals,
                                      bytes_accessed=bytes_accessed),
    )(query, tiles_tbe, hmask, hmaskT, *weights)
    return out[:B, :N_SIDES]


# ---------------------------- pure-JAX reference -----------------------------
def reference(query, tiles_tbe, P, *, n_heads, n_layers):
    """Forward pass of the module (norm_first decoder stack with tgt length 1, then
    LayerNorm -> Linear -> Softmax), mirroring the kernel's declared numerics
    (bf16 weights / bf16 head-mask matmuls, f32 accumulation)."""
    T, B, E = tiles_tbe.shape
    hmask, hmaskT = make_head_masks(E, n_heads)
    tiles2d = tiles_tbe.astype(jnp.bfloat16).reshape(T * B, E)

    def ln(x, w, b):
        mu = x.mean(-1, keepdims=True)
        xc = x - mu
        var = (xc * xc).mean(-1, keepdims=True)
        return xc * lax.rsqrt(var + EPS) * w + b

    def mm(a, w, b):
        return jnp.dot(a.astype(jnp.bfloat16), w,
                       preferred_element_type=jnp.float32) + b

    x = query.astype(jnp.float32)                                  # [B, E]
    for l in range(n_layers):
        x1 = ln(x, P["ln_w"][l, 0], P["ln_b"][l, 0])
        x = x + mm(mm(x1, P["sa_v_w"][l], P["sa_v_b"][l]),
                   P["sa_o_w"][l], P["sa_o_b"][l])

        x2 = ln(x, P["ln_w"][l, 1], P["ln_b"][l, 1])
        q = mm(x2, P["ca_q_w"][l], P["ca_q_b"][l])                 # [B, E]
        k = mm(tiles2d, P["ca_k_w"][l], P["ca_k_b"][l])            # [T*B, E]
        v = mm(tiles2d, P["ca_v_w"][l], P["ca_v_b"][l])
        qk = k.reshape(T, B, E) * q[None, :, :]
        scores = jnp.dot(qk.reshape(T * B, E).astype(jnp.bfloat16), hmask,
                         preferred_element_type=jnp.float32).reshape(T, B, n_heads)
        scores = scores - scores.max(0, keepdims=True)
        w_attn = jnp.exp(scores)
        w_attn = w_attn / w_attn.sum(0, keepdims=True)
        w_full = jnp.dot(w_attn.reshape(T * B, n_heads).astype(jnp.bfloat16), hmaskT,
                         preferred_element_type=jnp.float32)
        attn = jnp.sum(w_full.reshape(T, B, E) * v.reshape(T, B, E), axis=0)
        x = x + mm(attn, P["ca_o_w"][l], P["ca_o_b"][l])

        x3 = ln(x, P["ln_w"][l, 2], P["ln_b"][l, 2])
        x = x + mm(jax.nn.relu(mm(x3, P["ff1_w"][l], P["ff1_b"][l])),
                   P["ff2_w"][l], P["ff2_b"][l])

    y = ln(x, P["h_ln_w"], P["h_ln_b"])
    logits = mm(y, P["p_w"][:, :N_SIDES], P["p_b"][:, :N_SIDES])
    return jax.nn.softmax(logits, axis=-1)


# ------------------------------ parameter init -------------------------------
def init_params(key, E, n_heads, n_layers):
    Dff = 4 * E * 2 // 3  # matches dim_feedforward in the PyTorch module
    L = n_layers
    keys = iter(jax.random.split(key, 32))

    def w(shape, fan_in):
        return jax.random.normal(next(keys), shape, jnp.float32) / math.sqrt(fan_in)

    def b(shape):
        return jax.random.normal(next(keys), shape, jnp.float32) * 0.02

    return {
        "ln_w": 1.0 + 0.05 * jax.random.normal(next(keys), (L, 3, E), jnp.float32),
        "ln_b": 0.05 * jax.random.normal(next(keys), (L, 3, E), jnp.float32),
        "sa_v_w": w((L, E, E), E), "sa_v_b": b((L, 1, E)),
        "sa_o_w": w((L, E, E), E), "sa_o_b": b((L, 1, E)),
        "ca_q_w": w((L, E, E), E), "ca_q_b": b((L, 1, E)),
        "ca_k_w": w((L, E, E), E), "ca_k_b": b((L, 1, E)),
        "ca_v_w": w((L, E, E), E), "ca_v_b": b((L, 1, E)),
        "ca_o_w": w((L, E, E), E), "ca_o_b": b((L, 1, E)),
        "ff1_w": w((L, E, Dff), E), "ff1_b": b((L, 1, Dff)),
        "ff2_w": w((L, Dff, E), Dff), "ff2_b": b((L, 1, E)),
        "h_ln_w": 1.0 + 0.05 * jax.random.normal(next(keys), (1, E), jnp.float32),
        "h_ln_b": 0.05 * jax.random.normal(next(keys), (1, E), jnp.float32),
        "p_w": w((E, N_SIDES), E), "p_b": b((1, N_SIDES)),
    }


if __name__ == "__main__":
    # batch, n_tiles, embedding_dim, n_heads, n_layers (small demo shapes)
    B, T, E, H, L = 16, 8, 48, 6, 2
    key = jax.random.PRNGKey(0)
    k_t, k_q, k_p = jax.random.split(key, 3)

    tiles_tbe = jax.random.normal(k_t, (T, B, E), jnp.float32)   # [n_tiles, batch, embed]
    query = jax.random.normal(k_q, (B, E), jnp.float32)          # [batch, embed]
    params = prepare_params(init_params(k_p, E, H, L))

    # Default block_b=256 is capped to 2 batch blocks for this tiny batch (feeds both
    # v7x TensorCores) and shrunk further only if the VMEM budget requires it.
    out = select_side_pallas(query, tiles_tbe, params, n_heads=H, n_layers=L)
    out = jax.block_until_ready(out)

    ref = reference(query, tiles_tbe, params, n_heads=H, n_layers=L)

    assert out.shape == (B, N_SIDES)
    assert bool(jnp.all(jnp.isfinite(out)))
    # tolerance accounts for the approximate (EUP) reciprocal in the final softmax
    assert bool(jnp.allclose(jnp.sum(out, axis=-1), 1.0, atol=1e-2))
    assert bool(jnp.allclose(out, ref, atol=1e-2, rtol=1e-2)), \
        float(jnp.max(jnp.abs(out - ref)))
    print("KERNEL_OK")
</pallas_src>

<mosaic_0001>
module attributes {stable_mosaic.version = 11 : i64} {
  func.func @select_side_kernel(%arg0: i32, %arg1: i32, %arg2: memref<8x48xf32, #tpu.memory_space<vmem>>, %arg3: memref<8x8x48xbf16, #tpu.memory_space<vmem>>, %arg4: memref<48x6xbf16, #tpu.memory_space<vmem>>, %arg5: memref<6x48xbf16, #tpu.memory_space<vmem>>, %arg6: memref<1x3x48xf32, #tpu.memory_space<vmem>>, %arg7: memref<1x3x48xf32, #tpu.memory_space<vmem>>, %arg8: memref<1x48x48xbf16, #tpu.memory_space<vmem>>, %arg9: memref<1x1x48xf32, #tpu.memory_space<vmem>>, %arg10: memref<1x48x48xbf16, #tpu.memory_space<vmem>>, %arg11: memref<1x1x48xf32, #tpu.memory_space<vmem>>, %arg12: memref<1x48x48xbf16, #tpu.memory_space<vmem>>, %arg13: memref<1x1x48xf32, #tpu.memory_space<vmem>>, %arg14: memref<1x48x48xbf16, #tpu.memory_space<vmem>>, %arg15: memref<1x1x48xf32, #tpu.memory_space<vmem>>, %arg16: memref<1x48x48xbf16, #tpu.memory_space<vmem>>, %arg17: memref<1x1x48xf32, #tpu.memory_space<vmem>>, %arg18: memref<1x48x48xbf16, #tpu.memory_space<vmem>>, %arg19: memref<1x1x48xf32, #tpu.memory_space<vmem>>, %arg20: memref<1x48x128xbf16, #tpu.memory_space<vmem>>, %arg21: memref<1x1x128xf32, #tpu.memory_space<vmem>>, %arg22: memref<1x128x48xbf16, #tpu.memory_space<vmem>>, %arg23: memref<1x1x48xf32, #tpu.memory_space<vmem>>, %arg24: memref<1x48xf32, #tpu.memory_space<vmem>>, %arg25: memref<1x48xf32, #tpu.memory_space<vmem>>, %arg26: memref<48x128xbf16, #tpu.memory_space<vmem>>, %arg27: memref<1x128xf32, #tpu.memory_space<vmem>>, %arg28: memref<8x128xf32, #tpu.memory_space<vmem>>, %arg29: memref<8x48xf32, #tpu.memory_space<vmem>>) attributes {dimension_semantics = [#tpu.dimension_semantics<parallel>, #tpu.dimension_semantics<arbitrary>], iteration_bounds = array<i64: 2, 2>, scalar_prefetch = 0 : i64, scratch_operands = 1 : i64, tpu.core_type = #tpu.core_type<tc>, window_params = [{transform_indices = @transform_0, window_bounds = array<i64: 8, 48>}, {transform_indices = @transform_1, window_bounds = array<i64: 8, 8, 48>}, {pipeline_mode = #tpu.pipeline_mode<synchronous>, transform_indices = @transform_2, window_bounds = array<i64: 48, 6>}, {pipeline_mode = #tpu.pipeline_mode<synchronous>, transform_indices = @transform_3, window_bounds = array<i64: 6, 48>}, {transform_indices = @transform_4, window_bounds = array<i64: 1, 3, 48>}, {transform_indices = @transform_5, window_bounds = array<i64: 1, 3, 48>}, {transform_indices = @transform_6, window_bounds = array<i64: 1, 48, 48>}, {transform_indices = @transform_7, window_bounds = array<i64: 1, 1, 48>}, {transform_indices = @transform_8, window_bounds = array<i64: 1, 48, 48>}, {transform_indices = @transform_9, window_bounds = array<i64: 1, 1, 48>}, {transform_indices = @transform_10, window_bounds = array<i64: 1, 48, 48>}, {transform_indices = @transform_11, window_bounds = array<i64: 1, 1, 48>}, {transform_indices = @transform_12, window_bounds = array<i64: 1, 48, 48>}, {transform_indices = @transform_13, window_bounds = array<i64: 1, 1, 48>}, {transform_indices = @transform_14, window_bounds = array<i64: 1, 48, 48>}, {transform_indices = @transform_15, window_bounds = array<i64: 1, 1, 48>}, {transform_indices = @transform_16, window_bounds = array<i64: 1, 48, 48>}, {transform_indices = @transform_17, window_bounds = array<i64: 1, 1, 48>}, {transform_indices = @transform_18, window_bounds = array<i64: 1, 48, 128>}, {transform_indices = @transform_19, window_bounds = array<i64: 1, 1, 128>}, {transform_indices = @transform_20, window_bounds = array<i64: 1, 128, 48>}, {transform_indices = @transform_21, window_bounds = array<i64: 1, 1, 48>}, {pipeline_mode = #tpu.pipeline_mode<synchronous>, transform_indices = @transform_22, window_bounds = array<i64: 1, 48>}, {pipeline_mode = #tpu.pipeline_mode<synchronous>, transform_indices = @transform_23, window_bounds = array<i64: 1, 48>}, {pipeline_mode = #tpu.pipeline_mode<synchronous>, transform_indices = @transform_24, window_bounds = array<i64: 48, 128>}, {pipeline_mode = #tpu.pipeline_mode<synchronous>, transform_indices = @transform_25, window_bounds = array<i64: 1, 128>}, {transform_indices = @transform_26, window_bounds = array<i64: 8, 128>}]} {
    %c0_i32 = arith.constant 0 : i32
    %0 = arith.cmpi eq, %arg1, %c0_i32 : i32
    %1 = arith.extui %0 : i1 to i32
    %c0_i32_0 = arith.constant 0 : i32
    %2 = arith.cmpi ne, %1, %c0_i32_0 : i32
    scf.if %2 {
      %c0_94 = arith.constant 0 : index
      %c0_95 = arith.constant 0 : index
      %173 = vector.load %arg2[%c0_94, %c0_95] : memref<8x48xf32, #tpu.memory_space<vmem>>, vector<8x48xf32>
      %c0_96 = arith.constant 0 : index
      %c0_97 = arith.constant 0 : index
      %174 = vector.load %arg29[%c0_96, %c0_97] : memref<8x48xf32, #tpu.memory_space<vmem>>, vector<8x48xf32>
      tpu.vector_store %arg29[%c0_96, %c0_97], %173 {strides = array<i32>} : memref<8x48xf32, #tpu.memory_space<vmem>>, vector<8x48xf32>,
    } else {
    }
    %c0 = arith.constant 0 : index
    %c0_1 = arith.constant 0 : index
    %3 = vector.load %arg29[%c0, %c0_1] : memref<8x48xf32, #tpu.memory_space<vmem>>, vector<8x48xf32>
    %c0_2 = arith.constant 0 : index
    %c0_3 = arith.constant 0 : index
    %c0_4 = arith.constant 0 : index
    %4 = vector.load %arg6[%c0_2, %c0_3, %c0_4] : memref<1x3x48xf32, #tpu.memory_space<vmem>>, vector<1x3x48xf32>
    %5 = vector.shape_cast %4 : vector<1x3x48xf32> to vector<3x48xf32>
    %c0_5 = arith.constant 0 : index
    %c0_6 = arith.constant 0 : index
    %c0_7 = arith.constant 0 : index
    %6 = vector.load %arg7[%c0_5, %c0_6, %c0_7] : memref<1x3x48xf32, #tpu.memory_space<vmem>>, vector<1x3x48xf32>
    %7 = vector.shape_cast %6 : vector<1x3x48xf32> to vector<3x48xf32>
    %8 = vector.extract_strided_slice %5 {offsets = [0, 0], sizes = [1, 48], strides = [1, 1]} : vector<3x48xf32> to vector<1x48xf32>
    %9 = vector.extract_strided_slice %7 {offsets = [0, 0], sizes = [1, 48], strides = [1, 1]} : vector<3x48xf32> to vector<1x48xf32>
    %cst = arith.constant dense<0.000000e+00> : vector<8xf32>
    %10 = vector.multi_reduction <add>, %3, %cst [1] : vector<8x48xf32> to vector<8xf32>
    %11 = vector.shape_cast %10 : vector<8xf32> to vector<8x1xf32>
    %cst_8 = arith.constant 4.800000e+01 : f32
    %12 = vector.broadcast %cst_8 : f32 to vector<8x1xf32>
    %13 = arith.divf %11, %12 : vector<8x1xf32>
    %14 = vector.broadcast %13 : vector<8x1xf32> to vector<8x48xf32>
    %15 = arith.subf %3, %14 : vector<8x48xf32>
    %16 = arith.mulf %15, %15 : vector<8x48xf32>
    %cst_9 = arith.constant dense<0.000000e+00> : vector<8xf32>
    %17 = vector.multi_reduction <add>, %16, %cst_9 [1] : vector<8x48xf32> to vector<8xf32>
    %18 = vector.shape_cast %17 : vector<8xf32> to vector<8x1xf32>
    %cst_10 = arith.constant 4.800000e+01 : f32
    %19 = vector.broadcast %cst_10 : f32 to vector<8x1xf32>
    %20 = arith.divf %18, %19 : vector<8x1xf32>
    %cst_11 = arith.constant 9.99999974E-6 : f32
    %21 = vector.broadcast %cst_11 : f32 to vector<8x1xf32>
    %22 = arith.addf %20, %21 : vector<8x1xf32>
    %23 = math.rsqrt %22 : vector<8x1xf32>
    %24 = vector.broadcast %23 : vector<8x1xf32> to vector<8x48xf32>
    %25 = arith.mulf %15, %24 : vector<8x48xf32>
    %26 = vector.broadcast %8 : vector<1x48xf32> to vector<8x48xf32>
    %27 = arith.mulf %25, %26 : vector<8x48xf32>
    %28 = vector.broadcast %9 : vector<1x48xf32> to vector<8x48xf32>
    %29 = arith.addf %27, %28 : vector<8x48xf32>
    %30 = arith.truncf %29 : vector<8x48xf32> to vector<8x48xbf16>
    %c0_12 = arith.constant 0 : index
    %c0_13 = arith.constant 0 : index
    %c0_14 = arith.constant 0 : index
    %31 = vector.load %arg8[%c0_12, %c0_13, %c0_14] : memref<1x48x48xbf16, #tpu.memory_space<vmem>>, vector<1x48x48xbf16>
    %32 = vector.shape_cast %31 : vector<1x48x48xbf16> to vector<48x48xbf16>
    %cst_15 = arith.constant dense<0.000000e+00> : vector<8x48xf32>
    %33 = tpu.matmul %30, %32, %cst_15 {dimension_numbers = #tpu.dot_dimension_numbers<[1], [0], [0], [1], [0, 0, 1, 1], [], []>} : vector<8x48xbf16>, vector<48x48xbf16>, vector<8x48xf32> -> vector<8x48xf32>
    %c0_16 = arith.constant 0 : index
    %c0_17 = arith.constant 0 : index
    %c0_18 = arith.constant 0 : index
    %34 = vector.load %arg9[%c0_16, %c0_17, %c0_18] : memref<1x1x48xf32, #tpu.memory_space<vmem>>, vector<1x1x48xf32>
    %35 = vector.shape_cast %34 : vector<1x1x48xf32> to vector<1x48xf32>
    %36 = vector.broadcast %35 : vector<1x48xf32> to vector<8x48xf32>
    %37 = arith.addf %33, %36 : vector<8x48xf32>
    %38 = arith.truncf %37 : vector<8x48xf32> to vector<8x48xbf16>
    %c0_19 = arith.constant 0 : index
    %c0_20 = arith.constant 0 : index
    %c0_21 = arith.constant 0 : index
    %39 = vector.load %arg10[%c0_19, %c0_20, %c0_21] : memref<1x48x48xbf16, #tpu.memory_space<vmem>>, vector<1x48x48xbf16>
    %40 = vector.shape_cast %39 : vector<1x48x48xbf16> to vector<48x48xbf16>
    %cst_22 = arith.constant dense<0.000000e+00> : vector<8x48xf32>
    %41 = tpu.matmul %38, %40, %cst_22 {dimension_numbers = #tpu.dot_dimension_numbers<[1], [0], [0], [1], [0, 0, 1, 1], [], []>} : vector<8x48xbf16>, vector<48x48xbf16>, vector<8x48xf32> -> vector<8x48xf32>
    %c0_23 = arith.constant 0 : index
    %c0_24 = arith.constant 0 : index
    %c0_25 = arith.constant 0 : index
    %42 = vector.load %arg11[%c0_23, %c0_24, %c0_25] : memref<1x1x48xf32, #tpu.memory_space<vmem>>, vector<1x1x48xf32>
    %43 = vector.shape_cast %42 : vector<1x1x48xf32> to vector<1x48xf32>
    %44 = vector.broadcast %43 : vector<1x48xf32> to vector<8x48xf32>
    %45 = arith.addf %41, %44 : vector<8x48xf32>
    %46 = arith.addf %3, %45 : vector<8x48xf32>
    %47 = vector.extract_strided_slice %5 {offsets = [1, 0], sizes = [1, 48], strides = [1, 1]} : vector<3x48xf32> to vector<1x48xf32>
    %48 = vector.extract_strided_slice %7 {offsets = [1, 0], sizes = [1, 48], strides = [1, 1]} : vector<3x48xf32> to vector<1x48xf32>
    %cst_26 = arith.constant dense<0.000000e+00> : vector<8xf32>
    %49 = vector.multi_reduction <add>, %46, %cst_26 [1] : vector<8x48xf32> to vector<8xf32>
    %50 = vector.shape_cast %49 : vector<8xf32> to vector<8x1xf32>
    %cst_27 = arith.constant 4.800000e+01 : f32
    %51 = vector.broadcast %cst_27 : f32 to vector<8x1xf32>
    %52 = arith.divf %50, %51 : vector<8x1xf32>
    %53 = vector.broadcast %52 : vector<8x1xf32> to vector<8x48xf32>
    %54 = arith.subf %46, %53 : vector<8x48xf32>
    %55 = arith.mulf %54, %54 : vector<8x48xf32>
    %cst_28 = arith.constant dense<0.000000e+00> : vector<8xf32>
    %56 = vector.multi_reduction <add>, %55, %cst_28 [1] : vector<8x48xf32> to vector<8xf32>
    %57 = vector.shape_cast %56 : vector<8xf32> to vector<8x1xf32>
    %cst_29 = arith.constant 4.800000e+01 : f32
    %58 = vector.broadcast %cst_29 : f32 to vector<8x1xf32>
    %59 = arith.divf %57, %58 : vector<8x1xf32>
    %cst_30 = arith.constant 9.99999974E-6 : f32
    %60 = vector.broadcast %cst_30 : f32 to vector<8x1xf32>
    %61 = arith.addf %59, %60 : vector<8x1xf32>
    %62 = math.rsqrt %61 : vector<8x1xf32>
    %63 = vector.broadcast %62 : vector<8x1xf32> to vector<8x48xf32>
    %64 = arith.mulf %54, %63 : vector<8x48xf32>
    %65 = vector.broadcast %47 : vector<1x48xf32> to vector<8x48xf32>
    %66 = arith.mulf %64, %65 : vector<8x48xf32>
    %67 = vector.broadcast %48 : vector<1x48xf32> to vector<8x48xf32>
    %68 = arith.addf %66, %67 : vector<8x48xf32>
    %69 = arith.truncf %68 : vector<8x48xf32> to vector<8x48xbf16>
    %c0_31 = arith.constant 0 : index
    %c0_32 = arith.constant 0 : index
    %c0_33 = arith.constant 0 : index
    %70 = vector.load %arg12[%c0_31, %c0_32, %c0_33] : memref<1x48x48xbf16, #tpu.memory_space<vmem>>, vector<1x48x48xbf16>
    %71 = vector.shape_cast %70 : vector<1x48x48xbf16> to vector<48x48xbf16>
    %cst_34 = arith.constant dense<0.000000e+00> : vector<8x48xf32>
    %72 = tpu.matmul %69, %71, %cst_34 {dimension_numbers = #tpu.dot_dimension_numbers<[1], [0], [0], [1], [0, 0, 1, 1], [], []>} : vector<8x48xbf16>, vector<48x48xbf16>, vector<8x48xf32> -> vector<8x48xf32>
    %c0_35 = arith.constant 0 : index
    %c0_36 = arith.constant 0 : index
    %c0_37 = arith.constant 0 : index
    %73 = vector.load %arg13[%c0_35, %c0_36, %c0_37] : memref<1x1x48xf32, #tpu.memory_space<vmem>>, vector<1x1x48xf32>
    %74 = vector.shape_cast %73 : vector<1x1x48xf32> to vector<1x48xf32>
    %75 = vector.broadcast %74 : vector<1x48xf32> to vector<8x48xf32>
    %76 = arith.addf %72, %75 : vector<8x48xf32>
    %c0_38 = arith.constant 0 : index
    %c0_39 = arith.constant 0 : index
    %c0_40 = arith.constant 0 : index
    %77 = vector.load %arg3[%c0_38, %c0_39, %c0_40] : memref<8x8x48xbf16, #tpu.memory_space<vmem>>, vector<8x8x48xbf16>
    %78 = vector.shape_cast %77 : vector<8x8x48xbf16> to vector<64x48xbf16>
    %c0_41 = arith.constant 0 : index
    %c0_42 = arith.constant 0 : index
    %c0_43 = arith.constant 0 : index
    %79 = vector.load %arg14[%c0_41, %c0_42, %c0_43] : memref<1x48x48xbf16, #tpu.memory_space<vmem>>, vector<1x48x48xbf16>
    %80 = vector.shape_cast %79 : vector<1x48x48xbf16> to vector<48x48xbf16>
    %cst_44 = arith.constant dense<0.000000e+00> : vector<64x48xf32>
    %81 = tpu.matmul %78, %80, %cst_44 {dimension_numbers = #tpu.dot_dimension_numbers<[1], [0], [0], [1], [0, 0, 1, 1], [], []>} : vector<64x48xbf16>, vector<48x48xbf16>, vector<64x48xf32> -> vector<64x48xf32>
    %c0_45 = arith.constant 0 : index
    %c0_46 = arith.constant 0 : index
    %c0_47 = arith.constant 0 : index
    %82 = vector.load %arg15[%c0_45, %c0_46, %c0_47] : memref<1x1x48xf32, #tpu.memory_space<vmem>>, vector<1x1x48xf32>
    %83 = vector.shape_cast %82 : vector<1x1x48xf32> to vector<1x48xf32>
    %84 = vector.broadcast %83 : vector<1x48xf32> to vector<64x48xf32>
    %85 = arith.addf %81, %84 : vector<64x48xf32>
    %c0_48 = arith.constant 0 : index
    %c0_49 = arith.constant 0 : index
    %c0_50 = arith.constant 0 : index
    %86 = vector.load %arg16[%c0_48, %c0_49, %c0_50] : memref<1x48x48xbf16, #tpu.memory_space<vmem>>, vector<1x48x48xbf16>
    %87 = vector.shape_cast %86 : vector<1x48x48xbf16> to vector<48x48xbf16>
    %cst_51 = arith.constant dense<0.000000e+00> : vector<64x48xf32>
    %88 = tpu.matmul %78, %87, %cst_51 {dimension_numbers = #tpu.dot_dimension_numbers<[1], [0], [0], [1], [0, 0, 1, 1], [], []>} : vector<64x48xbf16>, vector<48x48xbf16>, vector<64x48xf32> -> vector<64x48xf32>
    %c0_52 = arith.constant 0 : index
    %c0_53 = arith.constant 0 : index
    %c0_54 = arith.constant 0 : index
    %89 = vector.load %arg17[%c0_52, %c0_53, %c0_54] : memref<1x1x48xf32, #tpu.memory_space<vmem>>, vector<1x1x48xf32>
    %90 = vector.shape_cast %89 : vector<1x1x48xf32> to vector<1x48xf32>
    %91 = vector.broadcast %90 : vector<1x48xf32> to vector<64x48xf32>
    %92 = arith.addf %88, %91 : vector<64x48xf32>
    %93 = vector.shape_cast %85 : vector<64x48xf32> to vector<8x8x48xf32>
    %94 = vector.shape_cast %76 : vector<8x48xf32> to vector<1x8x48xf32>
    %95 = vector.broadcast %94 : vector<1x8x48xf32> to vector<8x8x48xf32>
    %96 = arith.mulf %93, %95 : vector<8x8x48xf32>
    %97 = vector.shape_cast %96 : vector<8x8x48xf32> to vector<64x48xf32>
    %98 = arith.truncf %97 : vector<64x48xf32> to vector<64x48xbf16>
    %c0_55 = arith.constant 0 : index
    %c0_56 = arith.constant 0 : index
    %99 = vector.load %arg4[%c0_55, %c0_56] : memref<48x6xbf16, #tpu.memory_space<vmem>>, vector<48x6xbf16>
    %cst_57 = arith.constant dense<0.000000e+00> : vector<64x6xf32>
    %100 = tpu.matmul %98, %99, %cst_57 {dimension_numbers = #tpu.dot_dimension_numbers<[1], [0], [0], [1], [0, 0, 1, 1], [], []>} : vector<64x48xbf16>, vector<48x6xbf16>, vector<64x6xf32> -> vector<64x6xf32>
    %101 = vector.shape_cast %100 : vector<64x6xf32> to vector<8x8x6xf32>
    %cst_58 = arith.constant dense<0xFF800000> : vector<8x6xf32>
    %102 = vector.multi_reduction <maximumf>, %101, %cst_58 [0] : vector<8x8x6xf32> to vector<8x6xf32>
    %103 = vector.shape_cast %102 : vector<8x6xf32> to vector<1x8x6xf32>
    %104 = vector.broadcast %103 : vector<1x8x6xf32> to vector<8x8x6xf32>
    %105 = arith.subf %101, %104 : vector<8x8x6xf32>
    %106 = math.exp %105 : vector<8x8x6xf32>
    %cst_59 = arith.constant dense<0.000000e+00> : vector<8x6xf32>
    %107 = vector.multi_reduction <add>, %106, %cst_59 [0] : vector<8x8x6xf32> to vector<8x6xf32>
    %108 = vector.shape_cast %107 : vector<8x6xf32> to vector<1x8x6xf32>
    %109 = vector.broadcast %108 : vector<1x8x6xf32> to vector<8x8x6xf32>
    %110 = arith.divf %106, %109 : vector<8x8x6xf32>
    %111 = vector.shape_cast %110 : vector<8x8x6xf32> to vector<64x6xf32>
    %112 = arith.truncf %111 : vector<64x6xf32> to vector<64x6xbf16>
    %c0_60 = arith.constant 0 : index
    %c0_61 = arith.constant 0 : index
    %113 = vector.load %arg5[%c0_60, %c0_61] : memref<6x48xbf16, #tpu.memory_space<vmem>>, vector<6x48xbf16>
    %cst_62 = arith.constant dense<0.000000e+00> : vector<64x48xf32>
    %114 = tpu.matmul %112, %113, %cst_62 {dimension_numbers = #tpu.dot_dimension_numbers<[1], [0], [0], [1], [0, 0, 1, 1], [], []>} : vector<64x6xbf16>, vector<6x48xbf16>, vector<64x48xf32> -> vector<64x48xf32>
    %115 = vector.shape_cast %114 : vector<64x48xf32> to vector<8x8x48xf32>
    %116 = vector.shape_cast %92 : vector<64x48xf32> to vector<8x8x48xf32>
    %117 = arith.mulf %115, %116 : vector<8x8x48xf32>
    %cst_63 = arith.constant dense<0.000000e+00> : vector<8x48xf32>
    %118 = vector.multi_reduction <add>, %117, %cst_63 [0] : vector<8x8x48xf32> to vector<8x48xf32>
    %119 = arith.truncf %118 : vector<8x48xf32> to vector<8x48xbf16>
    %c0_64 = arith.constant 0 : index
    %c0_65 = arith.constant 0 : index
    %c0_66 = arith.constant 0 : index
    %120 = vector.load %arg18[%c0_64, %c0_65, %c0_66] : memref<1x48x48xbf16, #tpu.memory_space<vmem>>, vector<1x48x48xbf16>
    %121 = vector.shape_cast %120 : vector<1x48x48xbf16> to vector<48x48xbf16>
    %cst_67 = arith.constant dense<0.000000e+00> : vector<8x48xf32>
    %122 = tpu.matmul %119, %121, %cst_67 {dimension_numbers = #tpu.dot_dimension_numbers<[1], [0], [0], [1], [0, 0, 1, 1], [], []>} : vector<8x48xbf16>, vector<48x48xbf16>, vector<8x48xf32> -> vector<8x48xf32>
    %c0_68 = arith.constant 0 : index
    %c0_69 = arith.constant 0 : index
    %c0_70 = arith.constant 0 : index
    %123 = vector.load %arg19[%c0_68, %c0_69, %c0_70] : memref<1x1x48xf32, #tpu.memory_space<vmem>>, vector<1x1x48xf32>
    %124 = vector.shape_cast %123 : vector<1x1x48xf32> to vector<1x48xf32>
    %125 = vector.broadcast %124 : vector<1x48xf32> to vector<8x48xf32>
    %126 = arith.addf %122, %125 : vector<8x48xf32>
    %127 = arith.addf %46, %126 : vector<8x48xf32>
    %128 = vector.extract_strided_slice %5 {offsets = [2, 0], sizes = [1, 48], strides = [1, 1]} : vector<3x48xf32> to vector<1x48xf32>
    %129 = vector.extract_strided_slice %7 {offsets = [2, 0], sizes = [1, 48], strides = [1, 1]} : vector<3x48xf32> to vector<1x48xf32>
    %cst_71 = arith.constant dense<0.000000e+00> : vector<8xf32>
    %130 = vector.multi_reduction <add>, %127, %cst_71 [1] : vector<8x48xf32> to vector<8xf32>
    %131 = vector.shape_cast %130 : vector<8xf32> to vector<8x1xf32>
    %cst_72 = arith.constant 4.800000e+01 : f32
    %132 = vector.broadcast %cst_72 : f32 to vector<8x1xf32>
    %133 = arith.divf %131, %132 : vector<8x1xf32>
    %134 = vector.broadcast %133 : vector<8x1xf32> to vector<8x48xf32>
    %135 = arith.subf %127, %134 : vector<8x48xf32>
    %136 = arith.mulf %135, %135 : vector<8x48xf32>
    %cst_73 = arith.constant dense<0.000000e+00> : vector<8xf32>
    %137 = vector.multi_reduction <add>, %136, %cst_73 [1] : vector<8x48xf32> to vector<8xf32>
    %138 = vector.shape_cast %137 : vector<8xf32> to vector<8x1xf32>
    %cst_74 = arith.constant 4.800000e+01 : f32
    %139 = vector.broadcast %cst_74 : f32 to vector<8x1xf32>
    %140 = arith.divf %138, %139 : vector<8x1xf32>
    %cst_75 = arith.constant 9.99999974E-6 : f32
    %141 = vector.broadcast %cst_75 : f32 to vector<8x1xf32>
    %142 = arith.addf %140, %141 : vector<8x1xf32>
    %143 = math.rsqrt %142 : vector<8x1xf32>
    %144 = vector.broadcast %143 : vector<8x1xf32> to vector<8x48xf32>
    %145 = arith.mulf %135, %144 : vector<8x48xf32>
    %146 = vector.broadcast %128 : vector<1x48xf32> to vector<8x48xf32>
    %147 = arith.mulf %145, %146 : vector<8x48xf32>
    %148 = vector.broadcast %129 : vector<1x48xf32> to vector<8x48xf32>
    %149 = arith.addf %147, %148 : vector<8x48xf32>
    %150 = arith.truncf %149 : vector<8x48xf32> to vector<8x48xbf16>
    %c0_76 = arith.constant 0 : index
    %c0_77 = arith.constant 0 : index
    %c0_78 = arith.constant 0 : index
    %151 = vector.load %arg20[%c0_76, %c0_77, %c0_78] : memref<1x48x128xbf16, #tpu.memory_space<vmem>>, vector<1x48x128xbf16>
    %152 = vector.shape_cast %151 : vector<1x48x128xbf16> to vector<48x128xbf16>
    %cst_79 = arith.constant dense<0.000000e+00> : vector<8x128xf32>
    %153 = tpu.matmul %150, %152, %cst_79 {dimension_numbers = #tpu.dot_dimension_numbers<[1], [0], [0], [1], [0, 0, 1, 1], [], []>} : vector<8x48xbf16>, vector<48x128xbf16>, vector<8x128xf32> -> vector<8x128xf32>
    %c0_80 = arith.constant 0 : index
    %c0_81 = arith.constant 0 : index
    %c0_82 = arith.constant 0 : index
    %154 = vector.load %arg21[%c0_80, %c0_81, %c0_82] : memref<1x1x128xf32, #tpu.memory_space<vmem>>, vector<1x1x128xf32>
    %155 = vector.shape_cast %154 : vector<1x1x128xf32> to vector<1x128xf32>
    %156 = vector.broadcast %155 : vector<1x128xf32> to vector<8x128xf32>
    %157 = arith.addf %153, %156 : vector<8x128xf32>
    %cst_83 = arith.constant 0.000000e+00 : f32
    %158 = vector.broadcast %cst_83 : f32 to vector<8x128xf32>
    %159 = arith.maximumf %157, %158 : vector<8x128xf32>
    %160 = arith.truncf %159 : vector<8x128xf32> to vector<8x128xbf16>
    %c0_84 = arith.constant 0 : index
    %c0_85 = arith.constant 0 : index
    %c0_86 = arith.constant 0 : index
    %161 = vector.load %arg22[%c0_84, %c0_85, %c0_86] : memref<1x128x48xbf16, #tpu.memory_space<vmem>>, vector<1x128x48xbf16>
    %162 = vector.shape_cast %161 : vector<1x128x48xbf16> to vector<128x48xbf16>
    %cst_87 = arith.constant dense<0.000000e+00> : vector<8x48xf32>
    %163 = tpu.matmul %160, %162, %cst_87 {dimension_numbers = #tpu.dot_dimension_numbers<[1], [0], [0], [1], [0, 0, 1, 1], [], []>} : vector<8x128xbf16>, vector<128x48xbf16>, vector<8x48xf32> -> vector<8x48xf32>
    %c0_88 = arith.constant 0 : index
    %c0_89 = arith.constant 0 : index
    %c0_90 = arith.constant 0 : index
    %164 = vector.load %arg23[%c0_88, %c0_89, %c0_90] : memref<1x1x48xf32, #tpu.memory_space<vmem>>, vector<1x1x48xf32>
    %165 = vector.shape_cast %164 : vector<1x1x48xf32> to vector<1x48xf32>
    %166 = vector.broadcast %165 : vector<1x48xf32> to vector<8x48xf32>
    %167 = arith.addf %163, %166 : vector<8x48xf32>
    %168 = arith.addf %127, %167 : vector<8x48xf32>
    %c0_91 = arith.constant 0 : index
    %c0_92 = arith.constant 0 : index
    %169 = vector.load %arg29[%c0_91, %c0_92] : memref<8x48xf32, #tpu.memory_space<vmem>>, vector<8x48xf32>
    tpu.vector_store %arg29[%c0_91, %c0_92], %168 {strides = array<i32>} : memref<8x48xf32, #tpu.memory_space<vmem>>, vector<8x48xf32>,
    %c1_i32 = arith.constant 1 : i32
    %170 = arith.cmpi eq, %arg1, %c1_i32 : i32
    %171 = arith.extui %170 : i1 to i32
    %c0_i32_93 = arith.constant 0 : i32
    %172 = arith.cmpi ne, %171, %c0_i32_93 : i32
    scf.if %172 {
      %c0_94 = arith.constant 0 : index
      %c0_95 = arith.constant 0 : index
      %173 = vector.load %arg24[%c0_94, %c0_95] : memref<1x48xf32, #tpu.memory_space<vmem>>, vector<1x48xf32>
      %c0_96 = arith.constant 0 : index
      %c0_97 = arith.constant 0 : index
      %174 = vector.load %arg25[%c0_96, %c0_97] : memref<1x48xf32, #tpu.memory_space<vmem>>, vector<1x48xf32>
      %cst_98 = arith.constant dense<0.000000e+00> : vector<8xf32>
      %175 = vector.multi_reduction <add>, %168, %cst_98 [1] : vector<8x48xf32> to vector<8xf32>
      %176 = vector.shape_cast %175 : vector<8xf32> to vector<8x1xf32>
      %cst_99 = arith.constant 4.800000e+01 : f32
      %177 = vector.broadcast %cst_99 : f32 to vector<8x1xf32>
      %178 = arith.divf %176, %177 : vector<8x1xf32>
      %179 = vector.broadcast %178 : vector<8x1xf32> to vector<8x48xf32>
      %180 = arith.subf %168, %179 : vector<8x48xf32>
      %181 = arith.mulf %180, %180 : vector<8x48xf32>
      %cst_100 = arith.constant dense<0.000000e+00> : vector<8xf32>
      %182 = vector.multi_reduction <add>, %181, %cst_100 [1] : vector<8x48xf32> to vector<8xf32>
      %183 = vector.shape_cast %182 : vector<8xf32> to vector<8x1xf32>
      %cst_101 = arith.constant 4.800000e+01 : f32
      %184 = vector.broadcast %cst_101 : f32 to vector<8x1xf32>
      %185 = arith.divf %183, %184 : vector<8x1xf32>
      %cst_102 = arith.constant 9.99999974E-6 : f32
      %186 = vector.broadcast %cst_102 : f32 to vector<8x1xf32>
      %187 = arith.addf %185, %186 : vector<8x1xf32>
      %188 = math.rsqrt %187 : vector<8x1xf32>
      %189 = vector.broadcast %188 : vector<8x1xf32> to vector<8x48xf32>
      %190 = arith.mulf %180, %189 : vector<8x48xf32>
      %191 = vector.broadcast %173 : vector<1x48xf32> to vector<8x48xf32>
      %192 = arith.mulf %190, %191 : vector<8x48xf32>
      %193 = vector.broadcast %174 : vector<1x48xf32> to vector<8x48xf32>
      %194 = arith.addf %192, %193 : vector<8x48xf32>
      %195 = arith.truncf %194 : vector<8x48xf32> to vector<8x48xbf16>
      %c0_103 = arith.constant 0 : index
      %c0_104 = arith.constant 0 : index
      %196 = vector.load %arg26[%c0_103, %c0_104] : memref<48x128xbf16, #tpu.memory_space<vmem>>, vector<48x128xbf16>
      %cst_105 = arith.constant dense<0.000000e+00> : vector<8x128xf32>
      %197 = tpu.matmul %195, %196, %cst_105 {dimension_numbers = #tpu.dot_dimension_numbers<[1], [0], [0], [1], [0, 0, 1, 1], [], []>} : vector<8x48xbf16>, vector<48x128xbf16>, vector<8x128xf32> -> vector<8x128xf32>
      %c0_106 = arith.constant 0 : index
      %c0_107 = arith.constant 0 : index
      %198 = vector.load %arg27[%c0_106, %c0_107] : memref<1x128xf32, #tpu.memory_space<vmem>>, vector<1x128xf32>
      %199 = vector.broadcast %198 : vector<1x128xf32> to vector<8x128xf32>
      %200 = arith.addf %197, %199 : vector<8x128xf32>
      %cst_108 = arith.constant dense<0xFF800000> : vector<8xf32>
      %201 = vector.multi_reduction <maximumf>, %200, %cst_108 [1] : vector<8x128xf32> to vector<8xf32>
      %202 = vector.shape_cast %201 : vector<8xf32> to vector<8x1xf32>
      %203 = vector.broadcast %202 : vector<8x1xf32> to vector<8x128xf32>
      %204 = arith.subf %200, %203 : vector<8x128xf32>
      %205 = math.exp %204 : vector<8x128xf32>
      %cst_109 = arith.constant dense<0.000000e+00> : vector<8xf32>
      %206 = vector.multi_reduction <add>, %205, %cst_109 [1] : vector<8x128xf32> to vector<8xf32>
      %207 = vector.shape_cast %206 : vector<8xf32> to vector<8x1xf32>
      %208 = tpu.reciprocal %207 {approx = true} : vector<8x1xf32> -> vector<8x1xf32>
      %209 = vector.broadcast %208 : vector<8x1xf32> to vector<8x128xf32>
      %210 = arith.mulf %205, %209 : vector<8x128xf32>
      %c0_110 = arith.constant 0 : index
      %c0_111 = arith.constant 0 : index
      %211 = vector.load %arg28[%c0_110, %c0_111] : memref<8x128xf32, #tpu.memory_space<vmem>>, vector<8x128xf32>
      tpu.vector_store %arg28[%c0_110, %c0_111], %210 {strides = array<i32>} : memref<8x128xf32, #tpu.memory_space<vmem>>, vector<8x128xf32>,
    } else {
    }
    return
  }
  func.func @transform_0(%arg0: i32, %arg1: i32) -> (i32, i32) {
    %c0_i32 = arith.constant 0 : i32
    %c0_i32_0 = arith.constant 0 : i32
    return %arg0, %c0_i32 : i32, i32
  }
  func.func @transform_1(%arg0: i32, %arg1: i32) -> (i32, i32, i32) {
    %c0_i32 = arith.constant 0 : i32
    %c0_i32_0 = arith.constant 0 : i32
    %c0_i32_1 = arith.constant 0 : i32
    return %c0_i32, %arg0, %c0_i32_0 : i32, i32, i32
  }
  func.func @transform_2(%arg0: i32, %arg1: i32) -> (i32, i32) {
    %c0_i32 = arith.constant 0 : i32
    %c0_i32_0 = arith.constant 0 : i32
    %c0_i32_1 = arith.constant 0 : i32
    return %c0_i32, %c0_i32_0 : i32, i32
  }
  func.func @transform_3(%arg0: i32, %arg1: i32) -> (i32, i32) {
    %c0_i32 = arith.constant 0 : i32
    %c0_i32_0 = arith.constant 0 : i32
    %c0_i32_1 = arith.constant 0 : i32
    return %c0_i32, %c0_i32_0 : i32, i32
  }
  func.func @transform_4(%arg0: i32, %arg1: i32) -> (i32, i32, i32) {
    %c0_i32 = arith.constant 0 : i32
    %c0_i32_0 = arith.constant 0 : i32
    %c0_i32_1 = arith.constant 0 : i32
    return %arg1, %c0_i32, %c0_i32_0 : i32, i32, i32
  }
  func.func @transform_5(%arg0: i32, %arg1: i32) -> (i32, i32, i32) {
    %c0_i32 = arith.constant 0 : i32
    %c0_i32_0 = arith.constant 0 : i32
    %c0_i32_1 = arith.constant 0 : i32
    return %arg1, %c0_i32, %c0_i32_0 : i32, i32, i32
  }
  func.func @transform_6(%arg0: i32, %arg1: i32) -> (i32, i32, i32) {
    %c0_i32 = arith.constant 0 : i32
    %c0_i32_0 = arith.constant 0 : i32
    %c0_i32_1 = arith.constant 0 : i32
    return %arg1, %c0_i32, %c0_i32_0 : i32, i32, i32
  }
  func.func @transform_7(%arg0: i32, %arg1: i32) -> (i32, i32, i32) {
    %c0_i32 = arith.constant 0 : i32
    %c0_i32_0 = arith.constant 0 : i32
    %c0_i32_1 = arith.constant 0 : i32
    return %arg1, %c0_i32, %c0_i32_0 : i32, i32, i32
  }
  func.func @transform_8(%arg0: i32, %arg1: i32) -> (i32, i32, i32) {
    %c0_i32 = arith.constant 0 : i32
    %c0_i32_0 = arith.constant 0 : i32
    %c0_i32_1 = arith.constant 0 : i32
    return %arg1, %c0_i32, %c0_i32_0 : i32, i32, i32
  }
  func.func @transform_9(%arg0: i32, %arg1: i32) -> (i32, i32, i32) {
    %c0_i32 = arith.constant 0 : i32
    %c0_i32_0 = arith.constant 0 : i32
    %c0_i32_1 = arith.constant 0 : i32
    return %arg1, %c0_i32, %c0_i32_0 : i32, i32, i32
  }
  func.func @transform_10(%arg0: i32, %arg1: i32) -> (i32, i32, i32) {
    %c0_i32 = arith.constant 0 : i32
    %c0_i32_0 = arith.constant 0 : i32
    %c0_i32_1 = arith.constant 0 : i32
    return %arg1, %c0_i32, %c0_i32_0 : i32, i32, i32
  }
  func.func @transform_11(%arg0: i32, %arg1: i32) -> (i32, i32, i32) {
    %c0_i32 = arith.constant 0 : i32
    %c0_i32_0 = arith.constant 0 : i32
    %c0_i32_1 = arith.constant 0 : i32
    return %arg1, %c0_i32, %c0_i32_0 : i32, i32, i32
  }
  func.func @transform_12(%arg0: i32, %arg1: i32) -> (i32, i32, i32) {
    %c0_i32 = arith.constant 0 : i32
    %c0_i32_0 = arith.constant 0 : i32
    %c0_i32_1 = arith.constant 0 : i32
    return %arg1, %c0_i32, %c0_i32_0 : i32, i32, i32
  }
  func.func @transform_13(%arg0: i32, %arg1: i32) -> (i32, i32, i32) {
    %c0_i32 = arith.constant 0 : i32
    %c0_i32_0 = arith.constant 0 : i32
    %c0_i32_1 = arith.constant 0 : i32
    return %arg1, %c0_i32, %c0_i32_0 : i32, i32, i32
  }
  func.func @transform_14(%arg0: i32, %arg1: i32) -> (i32, i32, i32) {
    %c0_i32 = arith.constant 0 : i32
    %c0_i32_0 = arith.constant 0 : i32
    %c0_i32_1 = arith.constant 0 : i32
    return %arg1, %c0_i32, %c0_i32_0 : i32, i32, i32
  }
  func.func @transform_15(%arg0: i32, %arg1: i32) -> (i32, i32, i32) {
    %c0_i32 = arith.constant 0 : i32
    %c0_i32_0 = arith.constant 0 : i32
    %c0_i32_1 = arith.constant 0 : i32
    return %arg1, %c0_i32, %c0_i32_0 : i32, i32, i32
  }
  func.func @transform_16(%arg0: i32, %arg1: i32) -> (i32, i32, i32) {
    %c0_i32 = arith.constant 0 : i32
    %c0_i32_0 = arith.constant 0 : i32
    %c0_i32_1 = arith.constant 0 : i32
    return %arg1, %c0_i32, %c0_i32_0 : i32, i32, i32
  }
  func.func @transform_17(%arg0: i32, %arg1: i32) -> (i32, i32, i32) {
    %c0_i32 = arith.constant 0 : i32
    %c0_i32_0 = arith.constant 0 : i32
    %c0_i32_1 = arith.constant 0 : i32
    return %arg1, %c0_i32, %c0_i32_0 : i32, i32, i32
  }
  func.func @transform_18(%arg0: i32, %arg1: i32) -> (i32, i32, i32) {
    %c0_i32 = arith.constant 0 : i32
    %c0_i32_0 = arith.constant 0 : i32
    %c0_i32_1 = arith.constant 0 : i32
    return %arg1, %c0_i32, %c0_i32_0 : i32, i32, i32
  }
  func.func @transform_19(%arg0: i32, %arg1: i32) -> (i32, i32, i32) {
    %c0_i32 = arith.constant 0 : i32
    %c0_i32_0 = arith.constant 0 : i32
    %c0_i32_1 = arith.constant 0 : i32
    return %arg1, %c0_i32, %c0_i32_0 : i32, i32, i32
  }
  func.func @transform_20(%arg0: i32, %arg1: i32) -> (i32, i32, i32) {
    %c0_i32 = arith.constant 0 : i32
    %c0_i32_0 = arith.constant 0 : i32
    %c0_i32_1 = arith.constant 0 : i32
    return %arg1, %c0_i32, %c0_i32_0 : i32, i32, i32
  }
  func.func @transform_21(%arg0: i32, %arg1: i32) -> (i32, i32, i32) {
    %c0_i32 = arith.constant 0 : i32
    %c0_i32_0 = arith.constant 0 : i32
    %c0_i32_1 = arith.constant 0 : i32
    return %arg1, %c0_i32, %c0_i32_0 : i32, i32, i32
  }
  func.func @transform_22(%arg0: i32, %arg1: i32) -> (i32, i32) {
    %c0_i32 = arith.constant 0 : i32
    %c0_i32_0 = arith.constant 0 : i32
    %c0_i32_1 = arith.constant 0 : i32
    return %c0_i32, %c0_i32_0 : i32, i32
  }
  func.func @transform_23(%arg0: i32, %arg1: i32) -> (i32, i32) {
    %c0_i32 = arith.constant 0 : i32
    %c0_i32_0 = arith.constant 0 : i32
    %c0_i32_1 = arith.constant 0 : i32
    return %c0_i32, %c0_i32_0 : i32, i32
  }
  func.func @transform_24(%arg0: i32, %arg1: i32) -> (i32, i32) {
    %c0_i32 = arith.constant 0 : i32
    %c0_i32_0 = arith.constant 0 : i32
    %c0_i32_1 = arith.constant 0 : i32
    return %c0_i32, %c0_i32_0 : i32, i32
  }
  func.func @transform_25(%arg0: i32, %arg1: i32) -> (i32, i32) {
    %c0_i32 = arith.constant 0 : i32
    %c0_i32_0 = arith.constant 0 : i32
    %c0_i32_1 = arith.constant 0 : i32
    return %c0_i32, %c0_i32_0 : i32, i32
  }
  func.func @transform_26(%arg0: i32, %arg1: i32) -> (i32, i32) {
    %c0_i32 = arith.constant 0 : i32
    %c0_i32_0 = arith.constant 0 : i32
    return %arg0, %c0_i32 : i32, i32
  }
}

</mosaic_0001>

<bundles_post_ra>
// kernel: tpu_custom_call.1
= control target key start
LH: loop header
LB: loop body
LE: loop exit
PB: predicated region body
PF: predicated region fallthrough
CT: control target
= control target key end

     0   :  { %s4862_s0 = inlined_call_operand.hbm [shape: f32[16,48], index: 0, kind: input, shape index: {}]   ;;  %s4863_s1 = inlined_call_operand.vmem [shape: bf16[8,16,48], index: 1, kind: input, shape index: {}]   ;;  %s4864_s2 = inlined_call_operand.vmem [shape: bf16[48,6], index: 2, kind: input, shape index: {}]   ;;  %s4865_s3 = inlined_call_operand.hbm [shape: bf16[6,48], index: 3, kind: input, shape index: {}]   ;;  %s4866_s4 = inlined_call_operand.vmem [shape: f32[2,3,48], index: 4, kind: input, shape index: {}]   ;;  %s4867_s5 = inlined_call_operand.vmem [shape: f32[2,3,48], index: 5, kind: input, shape index: {}]   ;;  %s4868_s6 = inlined_call_operand.vmem [shape: bf16[2,48,48], index: 6, kind: input, shape index: {}]   ;;  %s4869_s7 = inlined_call_operand.hbm [shape: f32[2,1,48], index: 7, kind: input, shape index: {}]   ;;  %s4870_s8 = inlined_call_operand.vmem [shape: bf16[2,48,48], index: 8, kind: input, shape index: {}]   ;;  %s4871_s9 = inlined_call_operand.hbm [shape: f32[2,1,48], index: 9, kind: input, shape index: {}]   ;;  %s4872_s10 = inlined_call_operand.vmem [shape: bf16[2,48,48], index: 10, kind: input, shape index: {}]   ;;  %s4873_s11 = inlined_call_operand.hbm [shape: f32[2,1,48], index: 11, kind: input, shape index: {}]   ;;  %s4874_s12 = inlined_call_operand.hbm [shape: bf16[2,48,48], index: 12, kind: input, shape index: {}]   ;;  %s4875_s13 = inlined_call_operand.hbm [shape: f32[2,1,48], index: 13, kind: input, shape index: {}]   ;;  %s4876_s14 = inlined_call_operand.hbm [shape: bf16[2,48,48], index: 14, kind: input, shape index: {}]   ;;  %s4877_s15 = inlined_call_operand.vmem [shape: f32[2,1,48], index: 15, kind: input, shape index: {}]   ;;  %s4878_s16 = inlined_call_operand.hbm [shape: bf16[2,48,48], index: 16, kind: input, shape index: {}]   ;;  %s4879_s17 = inlined_call_operand.vmem [shape: f32[2,1,48], index: 17, kind: input, shape index: {}]   ;;  %s4880_s18 = inlined_call_operand.hbm [shape: bf16[2,48,128], index: 18, kind: input, shape index: {}]   ;;  %s4881_s19 = inlined_call_operand.vmem [shape: f32[2,1,128], index: 19, kind: input, shape index: {}]   ;;  %s4882_s20 = inlined_call_operand.vmem [shape: bf16[2,128,48], index: 20, kind: input, shape index: {}]   ;;  %s4883_s21 = inlined_call_operand.vmem [shape: f32[2,1,48], index: 21, kind: input, shape index: {}]   ;;  %s4884_s22 = inlined_call_operand.vmem [shape: f32[1,48], index: 22, kind: input, shape index: {}]   ;;  %s4885_s23 = inlined_call_operand.vmem [shape: f32[1,48], index: 23, kind: input, shape index: {}]   ;;  %s4886_s24 = inlined_call_operand.vmem [shape: bf16[48,128], index: 24, kind: input, shape index: {}]   ;;  %s4887_s25 = inlined_call_operand.vmem [shape: f32[1,128], index: 25, kind: input, shape index: {}]   ;;  %s4888_s26 = inlined_call_operand.hbm [shape: f32[16,128], index: 26, kind: output, shape index: {}]  }
   0x1   :  { %4928 = sst [smem:[#allocation40_spill]] %s4862_s0 }
   0x2   :  { %4929 = sst [smem:[#allocation41_spill]] %s4863_s1 }
   0x3   :  { %4930 = sst [smem:[#allocation42_spill]] %s4864_s2 }
   0x4   :  { %4931 = sst [smem:[#allocation43_spill]] %s4865_s3 }
   0x5   :  { %4932 = sst [smem:[#allocation44_spill]] %s4866_s4 }
   0x6   :  { %4933 = sst [smem:[#allocation45_spill]] %s4867_s5 }
   0x7   :  { %4934 = sst [smem:[#allocation46_spill]] %s4868_s6 }
   0x8   :  { %4935 = sst [smem:[#allocation47_spill]] %s4869_s7 }
   0x9   :  { %4936 = sst [smem:[#allocation48_spill]] %s4870_s8 }
   0xa   :  { %4937 = sst [smem:[#allocation49_spill]] %s4871_s9 }
   0xb   :  { %4938 = sst [smem:[#allocation50_spill]] %s4872_s10 }
   0xc   :  { %4939 = sst [smem:[#allocation51_spill]] %s4873_s11 }
   0xd   :  { %4940 = sst [smem:[#allocation52_spill]] %s4874_s12 }
   0xe   :  { %4941 = sst [smem:[#allocation53_spill]] %s4875_s13 }
   0xf   :  { %4942 = sst [smem:[#allocation54_spill]] %s4876_s14 }
  0x10   :  { %4943 = sst [smem:[#allocation55_spill]] %s4877_s15 }
  0x11   :  { %4944 = sst [smem:[#allocation56_spill]] %s4878_s16 }
  0x12   :  { %4945 = sst [smem:[#allocation57_spill]] %s4879_s17 }
  0x13   :  { %4946 = sst [smem:[#allocation58_spill]] %s4880_s18 }
  0x14   :  { %4947 = sst [smem:[#allocation59_spill]] %s4881_s19 }
  0x15   :  { %4948 = sst [smem:[#allocation60_spill]] %s4882_s20 }
  0x16   :  { %4949 = sst [smem:[#allocation61_spill]] %s4883_s21 }
  0x17   :  { %4950 = sst [smem:[#allocation62_spill]] %s4884_s22 }
  0x18   :  { %4951 = sst [smem:[#allocation63_spill]] %s4885_s23 }
  0x19   :  { %4952 = sst [smem:[#allocation64_spill]] %s4886_s24 }
  0x1a   :  { %4953 = sst [smem:[#allocation65_spill]] %s4887_s25 }
  0x1b   :  { %4954 = sst [smem:[#allocation66_spill]] %s4888_s26 }
  0x1c   :  { %31 = vsyncpa [#allocation4], 0 }
  0x1d   :  { %33 = vsyncpa [#allocation4 + $0x1], 0 }
  0x1e   :  { %34 = vsyncpa [#allocation8], 0 }
  0x1f   :  { %35 = vsyncpa [#allocation5], 0 }
  0x20   :  { %37 = vsyncpa [#allocation5 + $0x1], 0  ;;  %s4025_s27 = smov 0   ;;  %s4027_s3 = smov 0  }
  0x21   :  { %s4029_s7 = smov 0   ;;  %s4031_s28 = smov 0  }
  0x22   :  { %s4033_s8 = smov 0   ;;  %s4035_s4 = smov 0  }
  0x23   :  { %s4037_s29 = smov 0   ;;  %s4039_s0 = smov 0  }
  0x24   :  { %s4041_s9 = smov 0   ;;  %s4043_s30 = smov 0  }
  0x25   :  { %s4045_s2 = smov 0  }
  0x26 LB: > { %4955 = sst [smem:[#allocation22_spill]] %s3835_s3  ;;  %s4081_s5 = sadd.s32 4294967295, %s3871_s2   ;;  %s3871_s2 = sphi %s4045_s2, %s43_s2   ;;  %s3867_s30 = sphi %s4043_s30, %s5046_s30   ;;  %s3863_s9 = sphi %s4041_s9, %s5045_s9   ;;  %s3859_s0 = sphi %s4039_s0, %s5044_s0   ;;  %s3855_s29 = sphi %s4037_s29, %s5043_s29   ;;  %s3851_s4 = sphi %s4035_s4, %s5042_s4   ;;  %s3847_s8 = sphi %s4033_s8, %s5041_s8   ;;  %s3843_s28 = sphi %s4031_s28, %s5040_s28   ;;  %s3839_s7 = sphi %s4029_s7, %s5039_s7   ;;  %s3835_s3 = sphi %s4027_s3, %s5038_s3   ;;  %s3831_s27 = sphi %s4025_s27, %s5037_s27  }
  0x27   : > { %4956 = sst [smem:[#allocation23_spill]] %s3839_s7  ;;  %s2953_s10 = sadd.s32 4294967294, %s3871_s2  }
  0x28   : > { %4957 = sst [smem:[#allocation24_spill]] %s3843_s28  ;;  %s52_s6 = sadd.s32 1, %s3863_s9 }
  0x29   : > { %4958 = sst [smem:[#allocation25_spill]] %s3847_s8  ;;  %s55_s1 = sadd.s32 1, %s3867_s30 }
  0x2a   : > { %4959 = sst [smem:[#allocation26_spill]] %s3851_s4  ;;  %p53_p0 = scmp.ge.s32.totalorder %s52_s6, 2 }
  0x2b   : > { %4960 = sst [smem:[#allocation27_spill]] %s3855_s29  ;;  %s62_s26 = sadd.s32 1, %s3851_s4 }
  0x2c   : > { %4961 = sst [smem:[#allocation28_spill]] %s3859_s0  ;;  %p4898_p1 = scmp.ne.s32.totalorder %s3851_s4, %s3847_s8 }
  0x2d   : > { %4962 = sst [smem:[#allocation29_spill]] %s3863_s9  ;;  %p70_p2 = scmp.eq.s32.totalorder %s3871_s2, 0 }
  0x2e   : > { %4963 = sst [smem:[#allocation30_spill]] %s3867_s30  ;;  %s5048_s6 = smov (%p53_p0, %s52_s6), 0 }
  0x2f   : > { %4964 = sst [smem:[#allocation31_spill]] %s3871_s2  ;;  %s5050_s1 = smov (!%p53_p0, %s55_s1), %s3867_s30 }
  0x30   : > { %4965 = sst [smem:[#allocation32_spill]] %s5048_s6  ;;  %p4098_p3 = por %p70_p2, %p4898_p1 }
  0x31   : > { %p4897_p4 = scmp.ne.s32.totalorder %s3847_s8, %s3843_s28  ;;  %p57_p5 = scmp.ge.s32.totalorder %s5050_s1, 2 }
  0x32   : > { %s4966_s0 = scalar_select %p4098_p3, 1, 0 }
  0x33   : > { %p4906_p6 = scmp.eq.s32.totalorder %s4081_s5, 0  ;;  %s231_s25 = ssub.s32 %s3863_s9, %s5048_s6 }
  0x34   : > { %s234_s23 = sadd.s32 1, %s3839_s7  ;;  %s5052_s1 = smov (%p57_p5, %s5050_s1), 0 }
  0x35   : > { %4967 = sst [smem:[#allocation33_spill]] %s5052_s1  ;;  %p4115_p7 = por %p4906_p6, %p4897_p4 }
  0x36   : > { %p232_p8 = scmp.eq.s32.totalorder %s231_s25, 0  ;;  %s59_s24 = ssub.s32 %s3867_s30, %s5052_s1 }
  0x37   : > { %s4968_s22 = scalar_select %p4115_p7, 1, 0 }
  0x38   : > { %p241_p9 = scmp.ne.s32.totalorder %s3839_s7, %s3835_s3  ;;  %p60_p10 = scmp.eq.s32.totalorder %s59_s24, 0 }
  0x39   : > { %p247_p11 = scmp.ne.s32.totalorder %s3835_s3, %s3831_s27  ;;  %p719_p0 = scmp.eq.s32.totalorder %s4081_s5, 3 }
  0x3a   : > { %s4126_s6 = scalar_select %p232_p8, %s3839_s7, %s234_s23  }
  0x3b   : > { %s4129_s20 = scalar_select %p60_p10, %s3851_s4, %s62_s26  }
  0x3c   : > { %4969 = sst [smem:[#allocation34_spill]] %s4126_s6  ;;  %p4133_p12 = por %p241_p9, %p70_p2 }
  0x3d   : > { %4970 = sst [smem:[#allocation35_spill]] %s4129_s20  ;;  %p4139_p13 = por %p247_p11, %p4906_p6 }
  0x3e   : > { %s4971_s21 = scalar_select %p4133_p12, 1, 0 }
  0x3f   : > { %s4972_s19 = scalar_select %p4139_p13, 1, 0 }
  0x40   : > { %p725_p5 = scmp.eq.s32.totalorder %s2953_s10, 3  ;;  %p2954_p4 = scmp.ge.s32.totalorder %s3871_s2, 1 }
  0x41   : > { %p732_p1 = scmp.lt.s32.totalorder %s3871_s2, 5  ;;  %p4973_p7 = scmp.ne.s32.totalorder %s3851_s4, %s3847_s8 }
  0x42   : > { %p4976_p8 = scmp.ne.s32.totalorder %s3847_s8, %s3843_s28  ;;  %s3873_s26 = smov [#allocation7]  }
  0x43   : > { %p4149_p3 = por %p719_p0, %p4973_p7  ;;  %p4160_p2 = pnand %p2954_p4, %p732_p1 }
  0x44   : > { %p4156_p10 = por %p725_p5, %p4976_p8  ;;  %s748_s27 = sshll.u32 %s3873_s26, 4  ;;  %s749_s27 = int_to_ptr.vmem [resolvable:$true] %s748_s27 }
  0x45   : > { %s4974_s23 = scalar_select %p4149_p3, 1, 0 }
  0x46   : > { %s4977_s24 = scalar_select %p4156_p10, 1, 0 }
  0x47   : > { %4975 = sst [smem:[#allocation36_spill]] %s4974_s23  ;;  %p3286_p9 = pneg %p4160_p2 }
  0x48   : > { %4978 = sst [smem:[#allocation37_spill]] %s4977_s24  ;;  %s4981_s6 = sld [smem:[#allocation43_spill]] }
  0x49   : > { %s4979_s25 = scalar_select %p4160_p2, 1, 0 }
  0x4a   : > { %p4168_p7 = pnand %p3286_p9, %p4906_p6 }
  0x4c   : > { %p3463_p4 = pneg %p4168_p7 }
  0x4e   : > { %s3461_s24 = scalar_lea.hbm %s4981_s6, 64 }
  0x4f   : > { %p3462_p1 = scmp.ne.s32.totalorder %s4981_s6, %s3461_s24  ;;  %p3468_p5 = scmp.lt.u32.totalorder %s3461_s24, %s4981_s6 }
  0x51   : > { %p3464_p11 = pnand %p3463_p4, %p3462_p1 }
  0x53   : > { %p3465_p0 = pneg %p3464_p11 }
  0x55   : > { %p3470_p8 = pnand %p3468_p5, %p3465_p0 }
  0x57   : > { %3473 = shalt.err (!%p3470_p8)
}
  0x58   : > { %s3474_s15 = scalar_lea.vmem %s749_s27, 64  ;;  %p3482_p3 = scmp.lt.s32.totalorder %s749_s27, %s749_s27 }
  0x59   : > { %p3475_p9 = scmp.ne.s32.totalorder %s749_s27, %s3474_s15  ;;  %p3483_p13 = scmp.lt.s32.totalorder %s3474_s15, %s3474_s15 }
  0x5b   : > { %p3477_p6 = pnand %p3475_p9, %p3463_p4  ;;  %p3484_p2 = por %p3483_p13, %p3482_p3 }
  0x5d   : > { %p3478_p10 = pneg %p3477_p6 }
  0x5f   : > { %p3485_p12 = pnand %p3484_p2, %p3478_p10 }
  0x61   : > { %3488 = shalt.err (!%p3485_p12)
}
  0x62   : > { %3289 = dma.hbm_to_vmem [thread:$0]  (!%p4168_p7), %s4981_s6, 64, %s749_s27, [#allocation8]  }
  0x63   : > { %p2956_p1 = scmp.ge.s32.totalorder %s3871_s2, 4 }
  0x64   : > { %s771_s17 = sand.u32 (!%p2956_p1), 1, %s3871_s2   ;;  %s4913_s1 = sand.u32 (!%p2956_p1), 1, %s3851_s4  }
  0x65   : > { %767 = sbr.rel (%p2956_p1) target bundleno = 359 (0x167), region = 40  ;;  %s2957_s15 = sshll.u32 (!%p2956_p1), %s4913_s1, 3 }
  0x66   : > { %s2958_s23 = sshll.u32 (!%p2956_p1), %s3867_s30, 7  ;;  %s4982_s10 = sld [smem:[#allocation40_spill]] (!%p2956_p1) }
  0x67   : > { %s775_s27 = scalar_lea.vmem (!%p2956_p1), [#allocation3], %s2957_s15  ;;  %s4199_s28 = scalar_lea.sflag (!%p2956_p1), [#allocation4], %s771_s17 }
  0x68   : > { %s782_s20 = sshll.u32 (!%p2956_p1), %s775_s27, 4  ;;  %p4983_p6 = scmp.ne.s32.totalorder (!%p2956_p1), %s4966_s0, 0  ;;  %s783_s20 = int_to_ptr.vmem [resolvable:$true] %s782_s20 }
  0x6c   : > { %s4197_s29 = scalar_lea.hbm %s4982_s10, %s2958_s23  ;;  %s3493_s24 = scalar_lea.hbm %s4982_s10, 256 }
  0x6d   : > { %s3489_s6 = scalar_lea.hbm %s4197_s29, 128  ;;  %p3494_p10 = scmp.lt.u32.totalorder %s4197_s29, %s4982_s10 }
  0x6e   : > { %p3490_p3 = scmp.ne.s32.totalorder %s4197_s29, %s3489_s6  ;;  %p3495_p2 = scmp.lt.u32.totalorder %s3493_s24, %s3489_s6 }
  0x6f   : > { %p3497_p4 = scmp.lt.u32.totalorder %s3489_s6, %s4197_s29 }
  0x70   : > { %p3491_p12 = pnand %p3490_p3, %p4983_p6  ;;  %p3496_p7 = por %p3495_p2, %p3494_p10 }
  0x72   : > { %p3492_p13 = pneg %p3491_p12  ;;  %p3498_p11 = por %p3497_p4, %p3496_p7 }
  0x74   : > { %p3499_p0 = pnand %p3498_p11, %p3492_p13 }
  0x76   : > { %3502 = shalt.err (!%p3499_p0)
}
  0x77   : > { %s3503_s17 = scalar_lea.vmem %s783_s20, 128  ;;  %s3874_s15 = smov [#allocation3]  }
  0x78   : > { %p3504_p5 = scmp.ne.s32.totalorder %s783_s20, %s3503_s17  ;;  %s3507_s27 = sshll.u32 %s3874_s15, 4  ;;  %s3508_s27 = int_to_ptr.vmem [resolvable:$false] %s3507_s27 }
  0x79   : > { %s3509_s2 = scalar_lea.vmem %s3508_s27, 256  ;;  %p3510_p1 = scmp.lt.s32.totalorder %s783_s20, %s3508_s27 }
  0x7a   : > { %p3505_p8 = pnand %p3504_p5, %p4983_p6  ;;  %p3511_p3 = scmp.lt.s32.totalorder %s3509_s2, %s3503_s17 }
  0x7c   : > { %p3506_p9 = pneg %p3505_p8  ;;  %p3512_p12 = por %p3511_p3, %p3510_p1 }
  0x7e   : > { %p3513_p2 = pnand %p3512_p12, %p3506_p9 }
  0x80   : > { %3516 = shalt.err (!%p3513_p2)
}
  0x81   : > { %3264 = dma.hbm_to_vmem [thread:$0]  (%p4983_p6), %s4197_s29, 128, %s783_s20, %s4199_s28  }
  0x82   : > { %788 = sbr.rel (!%p4983_p6) target bundleno = 145 (0x91), region = 48  ;;  %s4984_s6 = sand.u32 (%p4983_p6), 1, %s3851_s4  }
  0x83   : > { %s2959_s1 = sshll.u32 (%p4983_p6), %s4984_s6, 5  ;;  %s2960_s24 = sshll.u32 (%p4983_p6), %s3867_s30, 2 }
  0x84   : > { %s4985_s15 = sld [smem:[#allocation41_spill]] (%p4983_p6)  ;;  %s792_s27 = scalar_lea.vmem (%p4983_p6), [#allocation6], %s2959_s1 }
  0x8a   : > { %s794_s17 = scalar_lea.vmem %s4985_s15, %s2960_s24 }
  0x8b   : > { %v810_v0 = vld [vmem:[%s794_s17] sm:$0xf]  ;;  %v812_v1 = vld [vmem:[%s794_s17 + $0x8] sm:$0xf]  ;;  %v814_v2 = vld [vmem:[%s794_s17 + $0x10] sm:$0xf] }
  0x8c   : > { %811 = vst [vmem:[%s792_s27] sm:$0xf] %v810_v0  ;;  %813 = vst [vmem:[%s792_s27 + $0x4] sm:$0xf] %v812_v1  ;;  %v816_v3 = vld [vmem:[%s794_s17 + $0x18] sm:$0xf] }
  0x8d   : > { %815 = vst [vmem:[%s792_s27 + $0x8] sm:$0xf] %v814_v2  ;;  %v818_v4 = vld [vmem:[%s794_s17 + $0x20] sm:$0xf]  ;;  %v820_v5 = vld [vmem:[%s794_s17 + $0x28] sm:$0xf] }
  0x8e   : > { %817 = vst [vmem:[%s792_s27 + $0xc] sm:$0xf] %v816_v3  ;;  %819 = vst [vmem:[%s792_s27 + $0x10] sm:$0xf] %v818_v4  ;;  %v822_v6 = vld [vmem:[%s794_s17 + $0x30] sm:$0xf] }
  0x8f   : > { %821 = vst [vmem:[%s792_s27 + $0x14] sm:$0xf] %v820_v5  ;;  %v824_v7 = vld [vmem:[%s794_s17 + $0x38] sm:$0xf]  ;;  %823 = vst [vmem:[%s792_s27 + $0x18] sm:$0xf] %v822_v6 }
  0x90   : > { %825 = vst [vmem:[%s792_s27 + $0x1c] sm:$0xf] %v824_v7 }
  0x91 PF: > { %s4228_s29 = sand.u32 1, %s3839_s7   ;;  %s4231_s0 = sshll.u32 %s3863_s9, 4 }
  0x92   : > { %s4986_s6 = sld [smem:[#allocation47_spill]]  ;;  %s890_s24 = scalar_lea.vmem [#allocation9], %s4228_s29 }
  0x93   : > { %s897_s23 = sshll.u32 %s890_s24, 4  ;;  %s4241_s26 = smul.u32 24, %s4228_s29  ;;  %s898_s23 = int_to_ptr.vmem [resolvable:$true] %s897_s23 }
  0x94   : > { %p4987_p13 = scmp.ne.s32.totalorder %s4971_s21, 0 }
  0x98   : > { %s4237_s1 = scalar_lea.hbm %s4986_s6, %s4231_s0  ;;  %s3521_s20 = scalar_lea.hbm %s4986_s6, 32 }
  0x99   : > { %s3517_s15 = scalar_lea.hbm %s4237_s1, 16  ;;  %p3522_p4 = scmp.lt.u32.totalorder %s4237_s1, %s4986_s6 }
  0x9a   : > { %p3518_p6 = scmp.ne.s32.totalorder %s4237_s1, %s3517_s15  ;;  %p3523_p11 = scmp.lt.u32.totalorder %s3521_s20, %s3517_s15 }
  0x9b   : > { %p3525_p5 = scmp.lt.u32.totalorder %s3517_s15, %s4237_s1 }
  0x9c   : > { %p3519_p10 = pnand %p3518_p6, %p4987_p13  ;;  %p3524_p0 = por %p3523_p11, %p3522_p4 }
  0x9e   : > { %p3520_p7 = pneg %p3519_p10  ;;  %p3526_p8 = por %p3525_p5, %p3524_p0 }
  0xa0   : > { %p3527_p9 = pnand %p3526_p8, %p3520_p7 }
  0xa2   : > { %3530 = shalt.err (!%p3527_p9)
}
  0xa3   : > { %s3531_s24 = scalar_lea.vmem %s898_s23, 16  ;;  %s3875_s30 = smov [#allocation9]  }
  0xa4   : > { %p3532_p1 = scmp.ne.s32.totalorder %s898_s23, %s3531_s24  ;;  %s3535_s4 = sshll.u32 %s3875_s30, 4  ;;  %s3536_s4 = int_to_ptr.vmem [resolvable:$false] %s3535_s4 }
  0xa5   : > { %s3537_s17 = scalar_lea.vmem %s3536_s4, 32  ;;  %p3538_p2 = scmp.lt.s32.totalorder %s898_s23, %s3536_s4 }
  0xa6   : > { %p3533_p3 = pnand %p3532_p1, %p4987_p13  ;;  %p3539_p6 = scmp.lt.s32.totalorder %s3537_s17, %s3531_s24 }
  0xa8   : > { %p3534_p12 = pneg %p3533_p3  ;;  %p3540_p10 = por %p3539_p6, %p3538_p2 }
  0xaa   : > { %p3541_p4 = pnand %p3540_p10, %p3534_p12 }
  0xac   : > { %3544 = shalt.err (!%p3541_p4)
}
  0xad   : > { %3265 = dma.hbm_to_vmem [thread:$0]  (%p4987_p13), %s4237_s1, 16, %s898_s23, %s4199_s28  }
  0xae   : > { %s4988_s27 = sld [smem:[#allocation49_spill]]  ;;  %s915_s4 = scalar_lea.vmem [#allocation10], %s4228_s29 }
  0xaf   : > { %s922_s30 = sshll.u32 %s915_s4, 4  ;;  %s923_s30 = int_to_ptr.vmem [resolvable:$true] %s922_s30 }
  0xb4   : > { %s4989_s20 = smov %s4988_s27  ;;  %s4265_s2 = scalar_lea.hbm %s4988_s27, %s4231_s0 }
  0xb5   : > { %s3545_s24 = scalar_lea.hbm %s4265_s2, 16  ;;  %s3549_s1 = scalar_lea.hbm %s4989_s20, 32 }
  0xb6   : > { %p3546_p7 = scmp.ne.s32.totalorder %s4265_s2, %s3545_s24  ;;  %p3550_p5 = scmp.lt.u32.totalorder %s4265_s2, %s4989_s20 }
  0xb7   : > { %p3551_p8 = scmp.lt.u32.totalorder %s3549_s1, %s3545_s24  ;;  %p3553_p1 = scmp.lt.u32.totalorder %s3545_s24, %s4265_s2 }
  0xb8   : > { %p3547_p11 = pnand %p3546_p7, %p4987_p13 }
  0xb9   : > { %p3552_p9 = por %p3551_p8, %p3550_p5 }
  0xba   : > { %p3548_p0 = pneg %p3547_p11 }
  0xbb   : > { %p3554_p3 = por %p3553_p1, %p3552_p9 }
  0xbd   : > { %p3555_p12 = pnand %p3554_p3, %p3548_p0 }
  0xbf   : > { %3558 = shalt.err (!%p3555_p12)
}
  0xc0   : > { %s3559_s15 = scalar_lea.vmem %s923_s30, 16  ;;  %s3876_s27 = smov [#allocation10]  }
  0xc1   : > { %p3560_p2 = scmp.ne.s32.totalorder %s923_s30, %s3559_s15  ;;  %s3563_s4 = sshll.u32 %s3876_s27, 4  ;;  %s3564_s4 = int_to_ptr.vmem [resolvable:$false] %s3563_s4 }
  0xc2   : > { %s3565_s6 = scalar_lea.vmem %s3564_s4, 32  ;;  %p3566_p4 = scmp.lt.s32.totalorder %s923_s30, %s3564_s4 }
  0xc3   : > { %p3561_p6 = pnand %p3560_p2, %p4987_p13  ;;  %p3567_p7 = scmp.lt.s32.totalorder %s3565_s6, %s3559_s15 }
  0xc5   : > { %p3562_p10 = pneg %p3561_p6  ;;  %p3568_p11 = por %p3567_p7, %p3566_p4 }
  0xc7   : > { %p3569_p5 = pnand %p3568_p11, %p3562_p10 }
  0xc9   : > { %3572 = shalt.err (!%p3569_p5)
}
  0xca   : > { %3266 = dma.hbm_to_vmem [thread:$0]  (%p4987_p13), %s4265_s2, 16, %s923_s30, %s4199_s28  }
  0xcb   : > { %s4990_s11 = sld [smem:[#allocation51_spill]]  ;;  %s940_s23 = scalar_lea.vmem [#allocation11], %s4228_s29 }
  0xcc   : > { %s947_s10 = sshll.u32 %s940_s23, 4  ;;  %s948_s10 = int_to_ptr.vmem [resolvable:$true] %s947_s10 }
  0xd1   : > { %s4290_s1 = scalar_lea.hbm %s4990_s11, %s4231_s0  ;;  %s3577_s2 = scalar_lea.hbm %s4990_s11, 32 }
  0xd2   : > { %s3573_s15 = scalar_lea.hbm %s4290_s1, 16  ;;  %p3578_p1 = scmp.lt.u32.totalorder %s4290_s1, %s4990_s11 }
  0xd3   : > { %p3574_p0 = scmp.ne.s32.totalorder %s4290_s1, %s3573_s15  ;;  %p3579_p3 = scmp.lt.u32.totalorder %s3577_s2, %s3573_s15 }
  0xd4   : > { %p3581_p2 = scmp.lt.u32.totalorder %s3573_s15, %s4290_s1 }
  0xd5   : > { %p3575_p8 = pnand %p3574_p0, %p4987_p13  ;;  %p3580_p12 = por %p3579_p3, %p3578_p1 }
  0xd7   : > { %p3576_p9 = pneg %p3575_p8  ;;  %p3582_p6 = por %p3581_p2, %p3580_p12 }
  0xd9   : > { %p3583_p10 = pnand %p3582_p6, %p3576_p9 }
  0xdb   : > { %3586 = shalt.err (!%p3583_p10)
}
  0xdc   : > { %s3587_s24 = scalar_lea.vmem %s948_s10, 16  ;;  %s3877_s17 = smov [#allocation11]  }
  0xdd   : > { %p3588_p4 = scmp.ne.s32.totalorder %s948_s10, %s3587_s24  ;;  %s3591_s23 = sshll.u32 %s3877_s17, 4  ;;  %s3592_s23 = int_to_ptr.vmem [resolvable:$false] %s3591_s23 }
  0xde   : > { %s3593_s27 = scalar_lea.vmem %s3592_s23, 32  ;;  %p3594_p5 = scmp.lt.s32.totalorder %s948_s10, %s3592_s23 }
  0xdf   : > { %p3589_p7 = pnand %p3588_p4, %p4987_p13  ;;  %p3595_p0 = scmp.lt.s32.totalorder %s3593_s27, %s3587_s24 }
  0xe1   : > { %p3590_p11 = pneg %p3589_p7  ;;  %p3596_p8 = por %p3595_p0, %p3594_p5 }
  0xe3   : > { %p3597_p1 = pnand %p3596_p8, %p3590_p11 }
  0xe5   : > { %3600 = shalt.err (!%p3597_p1)
}
  0xe6   : > { %3267 = dma.hbm_to_vmem [thread:$0]  (%p4987_p13), %s4290_s1, 16, %s948_s10, %s4199_s28  }
  0xe7   : > { %s4312_s15 = smul.u32 384, %s3863_s9  ;;  %s958_s4 = scalar_lea.vmem [#allocation12], %s4241_s26 }
  0xe8   : > { %s965_s2 = sshll.u32 %s958_s4, 4  ;;  %s4991_s12 = sld [smem:[#allocation52_spill]]  ;;  %s4315_s2 = int_to_ptr.vmem [resolvable:$true] %s965_s2 }
  0xee   : > { %s4321_s24 = scalar_lea.hbm %s4991_s12, %s4312_s15  ;;  %s3605_s23 = scalar_lea.hbm %s4991_s12, 768 }
  0xef   : > { %s3601_s17 = scalar_lea.hbm %s4321_s24, 384  ;;  %p3606_p2 = scmp.lt.u32.totalorder %s4321_s24, %s4991_s12 }
  0xf0   : > { %p3602_p9 = scmp.ne.s32.totalorder %s4321_s24, %s3601_s17  ;;  %p3607_p6 = scmp.lt.u32.totalorder %s3605_s23, %s3601_s17 }
  0xf1   : > { %p3609_p4 = scmp.lt.u32.totalorder %s3601_s17, %s4321_s24 }
  0xf2   : > { %p3603_p3 = pnand %p3602_p9, %p4987_p13  ;;  %p3608_p10 = por %p3607_p6, %p3606_p2 }
  0xf4   : > { %p3604_p12 = pneg %p3603_p3  ;;  %p3610_p7 = por %p3609_p4, %p3608_p10 }
  0xf6   : > { %p3611_p11 = pnand %p3610_p7, %p3604_p12 }
  0xf8   : > { %3614 = shalt.err (!%p3611_p11)
}
  0xf9   : > { %s3615_s30 = scalar_lea.vmem %s4315_s2, 384  ;;  %s3878_s6 = smov [#allocation12]  }
  0xfa   : > { %p3616_p5 = scmp.ne.s32.totalorder %s4315_s2, %s3615_s30  ;;  %s3619_s1 = sshll.u32 %s3878_s6, 4  ;;  %s3620_s1 = int_to_ptr.vmem [resolvable:$false] %s3619_s1 }
  0xfb   : > { %s3621_s10 = scalar_lea.vmem %s3620_s1, 768  ;;  %p3622_p1 = scmp.lt.s32.totalorder %s4315_s2, %s3620_s1 }
  0xfc   : > { %p3617_p0 = pnand %p3616_p5, %p4987_p13  ;;  %p3623_p9 = scmp.lt.s32.totalorder %s3621_s10, %s3615_s30 }
  0xfe   : > { %p3618_p8 = pneg %p3617_p0  ;;  %p3624_p3 = por %p3623_p9, %p3622_p1 }
 0x100   : > { %p3625_p2 = pnand %p3624_p3, %p3618_p8 }
 0x102   : > { %3628 = shalt.err (!%p3625_p2)
}
 0x103   : > { %s3879_s17 = smov 64   ;;  %s3880_s23 = smov 4  }
 0x104   : > { %3268 = dma.hbm_to_vmem [thread:$0]  (%p4987_p13), %s4321_s24, 384, %s4315_s2, %s4199_s28, %s3879_s17, %s3879_s17, %s3880_s23  }
 0x105   : > { %s4992_s13 = sld [smem:[#allocation53_spill]]  ;;  %s978_s6 = scalar_lea.vmem [#allocation13], %s4228_s29 }
 0x106   : > { %s985_s1 = sshll.u32 %s978_s6, 4  ;;  %s4993_s14 = sld [smem:[#allocation54_spill]]  ;;  %s986_s1 = int_to_ptr.vmem [resolvable:$true] %s985_s1 }
 0x10b   : > { %s4352_s30 = scalar_lea.hbm %s4992_s13, %s4231_s0  ;;  %s3633_s24 = scalar_lea.hbm %s4992_s13, 32 }
 0x10c   : > { %s4359_s12 = scalar_lea.hbm %s4993_s14, %s4312_s15  ;;  %s3629_s20 = scalar_lea.hbm %s4352_s30, 16 }
 0x10d   : > { %p3630_p12 = scmp.ne.s32.totalorder %s4352_s30, %s3629_s20  ;;  %p3634_p4 = scmp.lt.u32.totalorder %s4352_s30, %s4992_s13 }
 0x10e   : > { %p3635_p7 = scmp.lt.u32.totalorder %s3633_s24, %s3629_s20  ;;  %p3637_p5 = scmp.lt.u32.totalorder %s3629_s20, %s4352_s30 }
 0x10f   : > { %p3631_p6 = pnand %p3630_p12, %p4987_p13 }
 0x110   : > { %p3636_p11 = por %p3635_p7, %p3634_p4 }
 0x111   : > { %p3632_p10 = pneg %p3631_p6 }
 0x112   : > { %p3638_p0 = por %p3637_p5, %p3636_p11 }
 0x114   : > { %p3639_p8 = pnand %p3638_p0, %p3632_p10 }
 0x116   : > { %3642 = shalt.err (!%p3639_p8)
}
 0x117   : > { %s3643_s11 = scalar_lea.vmem %s986_s1, 16  ;;  %s3881_s29 = smov [#allocation13]  }
 0x118   : > { %p3644_p1 = scmp.ne.s32.totalorder %s986_s1, %s3643_s11  ;;  %s3647_s6 = sshll.u32 %s3881_s29, 4  ;;  %s3648_s6 = int_to_ptr.vmem [resolvable:$false] %s3647_s6 }
 0x119   : > { %s3649_s10 = scalar_lea.vmem %s3648_s6, 32  ;;  %p3650_p2 = scmp.lt.s32.totalorder %s986_s1, %s3648_s6 }
 0x11a   : > { %p3645_p9 = pnand %p3644_p1, %p4987_p13  ;;  %p3651_p12 = scmp.lt.s32.totalorder %s3649_s10, %s3643_s11 }
 0x11c   : > { %p3646_p3 = pneg %p3645_p9  ;;  %p3652_p6 = por %p3651_p12, %p3650_p2 }
 0x11e   : > { %p3653_p4 = pnand %p3652_p6, %p3646_p3 }
 0x120   : > { %3656 = shalt.err (!%p3653_p4)
}
 0x121   : > { %3269 = dma.hbm_to_vmem [thread:$0]  (%p4987_p13), %s4352_s30, 16, %s986_s1, %s4199_s28  }
 0x122   : > { %s996_s20 = scalar_lea.vmem [#allocation14], %s4241_s26  ;;  %s4994_s16 = sld [smem:[#allocation56_spill]] }
 0x123   : > { %s1003_s2 = sshll.u32 %s996_s20, 4  ;;  %s3657_s4 = scalar_lea.hbm %s4359_s12, 384  ;;  %s4380_s2 = int_to_ptr.vmem [resolvable:$true] %s1003_s2 }
 0x124   : > { %p3658_p10 = scmp.ne.s32.totalorder %s4359_s12, %s3657_s4  ;;  %s3661_s6 = scalar_lea.hbm %s4993_s14, 768 }
 0x125   : > { %p3662_p5 = scmp.lt.u32.totalorder %s4359_s12, %s4993_s14  ;;  %p3663_p0 = scmp.lt.u32.totalorder %s3661_s6, %s3657_s4 }
 0x126   : > { %p3659_p7 = pnand %p3658_p10, %p4987_p13  ;;  %p3665_p1 = scmp.lt.u32.totalorder %s3657_s4, %s4359_s12 }
 0x127   : > { %p3664_p8 = por %p3663_p0, %p3662_p5 }
 0x128   : > { %s4386_s27 = scalar_lea.hbm %s4994_s16, %s4312_s15  ;;  %p3660_p11 = pneg %p3659_p7 }
 0x129   : > { %p3666_p9 = por %p3665_p1, %p3664_p8 }
 0x12b   : > { %p3667_p3 = pnand %p3666_p9, %p3660_p11 }
 0x12d   : > { %3670 = shalt.err (!%p3667_p3)
}
 0x12e   : > { %s3671_s1 = scalar_lea.vmem %s4380_s2, 384  ;;  %s3882_s20 = smov [#allocation14]  }
 0x12f   : > { %p3672_p2 = scmp.ne.s32.totalorder %s4380_s2, %s3671_s1  ;;  %s3675_s0 = sshll.u32 %s3882_s20, 4  ;;  %s3676_s0 = int_to_ptr.vmem [resolvable:$false] %s3675_s0 }
 0x130   : > { %s3677_s24 = scalar_lea.vmem %s3676_s0, 768  ;;  %p3678_p4 = scmp.lt.s32.totalorder %s4380_s2, %s3676_s0 }
 0x131   : > { %p3673_p12 = pnand %p3672_p2, %p4987_p13  ;;  %p3679_p10 = scmp.lt.s32.totalorder %s3677_s24, %s3671_s1 }
 0x133   : > { %p3674_p6 = pneg %p3673_p12  ;;  %p3680_p7 = por %p3679_p10, %p3678_p4 }
 0x135   : > { %p3681_p5 = pnand %p3680_p7, %p3674_p6 }
 0x137   : > { %3684 = shalt.err (!%p3681_p5)
}
 0x138   : > { %3270 = dma.hbm_to_vmem [thread:$0]  (%p4987_p13), %s4359_s12, 384, %s4380_s2, %s4199_s28, %s3879_s17, %s3879_s17, %s3880_s23  }
 0x139   : > { %s1023_s4 = scalar_lea.vmem [#allocation15], %s4241_s26  ;;  %s4995_s18 = sld [smem:[#allocation58_spill]] }
 0x13a   : > { %s1030_s11 = sshll.u32 %s1023_s4, 4  ;;  %s3685_s30 = scalar_lea.hbm %s4386_s27, 384  ;;  %s4414_s11 = int_to_ptr.vmem [resolvable:$true] %s1030_s11 }
 0x13b   : > { %p3686_p11 = scmp.ne.s32.totalorder %s4386_s27, %s3685_s30  ;;  %s3689_s0 = scalar_lea.hbm %s4994_s16, 768 }
 0x13c   : > { %p3690_p1 = scmp.lt.u32.totalorder %s4386_s27, %s4994_s16  ;;  %p3691_p9 = scmp.lt.u32.totalorder %s3689_s0, %s3685_s30 }
 0x13d   : > { %p3687_p0 = pnand %p3686_p11, %p4987_p13  ;;  %p3693_p2 = scmp.lt.u32.totalorder %s3685_s30, %s4386_s27 }
 0x13e   : > { %p3692_p3 = por %p3691_p9, %p3690_p1 }
 0x13f   : > { %s4420_s10 = scalar_lea.hbm %s4995_s18, %s4312_s15  ;;  %p3688_p8 = pneg %p3687_p0 }
 0x140   : > { %p3694_p12 = por %p3693_p2, %p3692_p3 }
 0x142   : > { %p3695_p6 = pnand %p3694_p12, %p3688_p8 }
 0x144   : > { %3698 = shalt.err (!%p3695_p6)
}
 0x145   : > { %s3699_s15 = scalar_lea.vmem %s4414_s11, 384  ;;  %s3883_s2 = smov [#allocation15]  }
 0x146   : > { %p3700_p4 = scmp.ne.s32.totalorder %s4414_s11, %s3699_s15  ;;  %s3703_s4 = sshll.u32 %s3883_s2, 4  ;;  %s3704_s4 = int_to_ptr.vmem [resolvable:$false] %s3703_s4 }
 0x147   : > { %s3705_s29 = scalar_lea.vmem %s3704_s4, 768  ;;  %p3706_p5 = scmp.lt.s32.totalorder %s4414_s11, %s3704_s4 }
 0x148   : > { %p3701_p10 = pnand %p3700_p4, %p4987_p13  ;;  %p3707_p11 = scmp.lt.s32.totalorder %s3705_s29, %s3699_s15 }
 0x14a   : > { %p3702_p7 = pneg %p3701_p10  ;;  %p3708_p0 = por %p3707_p11, %p3706_p5 }
 0x14c   : > { %p3709_p1 = pnand %p3708_p0, %p3702_p7 }
 0x14e   : > { %3712 = shalt.err (!%p3709_p1)
}
 0x14f   : > { %3271 = dma.hbm_to_vmem [thread:$0]  (%p4987_p13), %s4386_s27, 384, %s4414_s11, %s4199_s28, %s3879_s17, %s3879_s17, %s3880_s23  }
 0x150   : > { %s1050_s6 = scalar_lea.vmem [#allocation16], %s4241_s26  ;;  %s3713_s1 = scalar_lea.hbm %s4420_s10, 384 }
 0x151   : > { %s1057_s30 = sshll.u32 %s1050_s6, 4  ;;  %p3714_p8 = scmp.ne.s32.totalorder %s4420_s10, %s3713_s1  ;;  %s4448_s30 = int_to_ptr.vmem [resolvable:$true] %s1057_s30 }
 0x152   : > { %s3717_s24 = scalar_lea.hbm %s4995_s18, 768  ;;  %p3718_p2 = scmp.lt.u32.totalorder %s4420_s10, %s4995_s18 }
 0x153   : > { %p3715_p9 = pnand %p3714_p8, %p4987_p13  ;;  %p3719_p12 = scmp.lt.u32.totalorder %s3717_s24, %s3713_s1 }
 0x154   : > { %p3721_p4 = scmp.lt.u32.totalorder %s3713_s1, %s4420_s10 }
 0x155   : > { %p3716_p3 = pneg %p3715_p9  ;;  %p3720_p6 = por %p3719_p12, %p3718_p2 }
 0x157   : > { %p3722_p10 = por %p3721_p4, %p3720_p6 }
 0x159   : > { %p3723_p7 = pnand %p3722_p10, %p3716_p3 }
 0x15b   : > { %3726 = shalt.err (!%p3723_p7)
}
 0x15c   : > { %s3727_s26 = scalar_lea.vmem %s4448_s30, 384  ;;  %s3884_s27 = smov [#allocation16]  }
 0x15d   : > { %p3728_p5 = scmp.ne.s32.totalorder %s4448_s30, %s3727_s26  ;;  %s3731_s11 = sshll.u32 %s3884_s27, 4  ;;  %s3732_s11 = int_to_ptr.vmem [resolvable:$false] %s3731_s11 }
 0x15e   : > { %s3733_s2 = scalar_lea.vmem %s3732_s11, 768  ;;  %p3734_p1 = scmp.lt.s32.totalorder %s4448_s30, %s3732_s11 }
 0x15f   : > { %p3729_p11 = pnand %p3728_p5, %p4987_p13  ;;  %p3735_p8 = scmp.lt.s32.totalorder %s3733_s2, %s3727_s26 }
 0x161   : > { %p3730_p0 = pneg %p3729_p11  ;;  %p3736_p9 = por %p3735_p8, %p3734_p1 }
 0x163   : > { %p3737_p2 = pnand %p3736_p9, %p3730_p0 }
 0x165   : > { %3740 = shalt.err (!%p3737_p2)
}
 0x166   : > { %3272 = dma.hbm_to_vmem [thread:$0]  (%p4987_p13), %s4420_s10, 384, %s4448_s30, %s4199_s28, %s3879_s17, %s3879_s17, %s3880_s23  }
 0x167 PF: > { %p4996_p3 = scmp.ne.s32.totalorder %s4979_s25, 0 }
 0x169   : > { %1089 = sbr.rel (%p4996_p3) target bundleno = 4033 (0xfc1), region = 161 }
 0x170   : > { %s1091_s4 = sand.u32 1, %s4081_s5   ;;  %s4479_s29 = sand.u32 1, %s3847_s8  }
 0x171   : > { %s4921_s21 = sshll.u32 %s4479_s29, 3  ;;  %s1092_s6 = scalar_lea.sflag [#allocation4], %s1091_s4 }
 0x172   : > { %s4484_s1 = scalar_lea.vmem [#allocation3], %s4921_s21  ;;  %p4997_p12 = scmp.ne.s32.totalorder %s4968_s22, 0 }
 0x174   : > { %3814 = dma.done.wait (%p4997_p12), %s1092_s6, 128  }
 0x175   : > { %3816 = vsyncadd (%p4997_p12), %s1092_s6, 4294967168  ;;  %s2971_s25 = sshll.u32 %s4479_s29, 5  ;;  %p4999_p13 = scmp.eq.s32.totalorder %s4081_s5, 0 }
 0x176   : > { %s4491_s28 = scalar_lea.vmem [#allocation6], %s2971_s25 }
 0x177   : > { %4998 = sst [smem:[#allocation38_spill]] %s4491_s28 }
 0x178   : > { %3818 = dma.done.wait (%p4999_p13), [#allocation8], 64   ;;  %p5000_p6 = pmov %p4999_p13 }
 0x179   : > { %s4498_s17 = sand.u32 1, %s3835_s3   ;;  %p5001_p4 = scmp.ne.s32.totalorder %s4972_s19, 0 }
 0x17a   : > { %3820 = vsyncadd (%p5000_p6), [#allocation8], 4294967232 }
 0x17b   : > { %3822 = dma.done.wait (%p5001_p4), %s1092_s6, 1600  }
 0x17c   : > { %3824 = vsyncadd (%p5001_p4), %s1092_s6, 4294965696  ;;  %s5002_s22 = sld [smem:[#allocation27_spill]]  ;;  %s3260_s10 = smul.u32 24, %s4498_s17 }
 0x17d   : > { %s5003_s24 = sld [smem:[#allocation44_spill]]  ;;  %s5004_s27 = sld [smem:[#allocation45_spill]] }
 0x17e   : > { %s5005_s6 = sld [smem:[#allocation46_spill]]  ;;  %s5006_s13 = sld [smem:[#allocation48_spill]] }
 0x17f   : > { %s5008_s0 = sld [smem:[#allocation50_spill]]  ;;  %s5010_s2 = sld [smem:[#allocation57_spill]] }
 0x180   : > { %s5011_s7 = sld [smem:[#allocation59_spill]]  ;;  %s5012_s28 = sld [smem:[#allocation61_spill]] }
 0x181   : > { %s5013_s20 = sld [smem:[#allocation60_spill]]  ;;  %s1122_s18 = scalar_lea.vmem [#allocation10], %s4498_s17 }
 0x182   : > { %p1323_p10 = scmp.lt.s32.totalorder %s5002_s22, 1  ;;  %s1130_s15 = scalar_lea.vmem [#allocation11], %s4498_s17 }
 0x183   : > { %s1147_s9 = scalar_lea.vmem [#allocation13], %s4498_s17  ;;  %s5014_s8 = sshll.u32 %s4479_s29, 3 }
 0x184   : > { %s4508_s5 = scalar_select %p1323_p10, %s5002_s22, 1 }
 0x185   : > { %p2981_p7 = scmp.ne.s32.totalorder %s5002_s22, 0 }
 0x186   : > { %s2974_s30 = sshll.u32 %s4508_s5, 2  ;;  %s3261_s19 = smul.u32 24, %s4508_s5  ;;  %v1368_v8 = vld [vmem:[%s4484_s1] sm:$0xff] (!%p2981_p7)  ;;  %vm1369_vm0 = vcmask (!%p2981_p7), 392192  }
 0x187   : > { %s4515_s12 = scalar_lea.vmem %s5003_s24, %s2974_s30  ;;  %s4520_s11 = scalar_lea.vmem %s5004_s27, %s2974_s30  ;;  %1370 = vst.msk [vmem:[#allocation2] sm:$0xff] (!%p2981_p7), %vm1369_vm0, %v1368_v8 }
 0x188   : > { %s4525_s25 = scalar_lea.vmem %s5005_s6, %s3261_s19  ;;  %s4530_s14 = scalar_lea.vmem %s5006_s13, %s3261_s19 }
 0x189   : > { %5007 = sst [smem:[#allocation39_spill]] %s4530_s14  ;;  %s4535_s24 = scalar_lea.vmem %s5008_s0, %s3261_s19 }
 0x18a   : > { %s5009_s30 = sld [smem:[#allocation55_spill]]  ;;  %s1351_s4 = scalar_lea.vmem %s5010_s2, %s4508_s5 }
 0x18b   : > { %s1354_s21 = scalar_lea.vmem %s5011_s7, %s4508_s5  ;;  %s3059_s23 = sshll.u32 %s4508_s5, 6 }
 0x18c   : > { %s1362_s14 = scalar_lea.vmem %s5012_s28, %s4508_s5  ;;  %s4557_s0 = scalar_lea.vmem %s5013_s20, %s3059_s23 }
 0x18d   : > { %s4564_s27 = scalar_lea.vmem [#allocation14], %s3260_s10  ;;  %s4566_s2 = scalar_lea.vmem [#allocation15], %s3260_s10 }
 0x18e   : > { %s4568_s7 = scalar_lea.vmem [#allocation16], %s3260_s10  ;;  %s4572_s6 = scalar_lea.vmem [#allocation17], %s5014_s8 }
 0x18f   : > { %1367 = sbr.rel (%p2981_p7) target bundleno = 406 (0x196), region = 209 }
 0x190   : > { %s1348_s26 = scalar_lea.vmem %s5009_s30, %s4508_s5  ;;  %s4561_s30 = scalar_lea.vmem [#allocation12], %s3260_s10 }
 0x196 PF: > { %v4576_v9 = vld [vmem:[#allocation2] sm:$0xff]  ;;  %vm1374_vm1 = vcmask 392192   ;;  %v3885_v17 = vmov 0.0   ;;  %vm3886_vm2 = vmmov 0   ;;  %v3393_v18 = vld [vmem:[%s4525_s25 + $0x8] sm:$0xff]   ;;  %v3394_v19 = vld [vmem:[%s4525_s25 + $0x10] sm:$0xff]   ;;  %v1389_v22 = vlaneseq }
 0x197   : > { %v1375_v10 = vsel %vm1374_vm1, %v4576_v9, 0.0  ;;  %v3392_v16 = vld [vmem:[%s4525_s25] sm:$0xff]   ;;  %3119 = vmatprep.subr.bf16.mxu0 %v3885_v17  ;;  %3125 = vmatprep.mubr.msk.bf16.mxu0 %vm3886_vm2, %v3885_v17  ;;  %s5015_s3 = sld [smem:[#allocation39_spill]]  ;;  %s5016_s1 = scalar_lea.vmem [#allocation9], %s4498_s17  ;;  %v3400_v60 = vld [vmem:[%s4561_s30 + $0x10] sm:$0xff]   ;;  %vm2074_vm3 = vcmask 1042432  }
 0x198   : > { %1376 = vadd.xlane.f32.xlu0 %v1375_v10  ;;  %3120 = vmatpush3.bf16.msra.mxu0 %v3392_v16  ;;  %v4591_v24 = vshrl.u32 %v1389_v22, 7  ;;  %v4595_v26 = vld [vmem:[%s4515_s12] sm:$0x7]  ;;  %s5017_s28 = sld [smem:[#allocation38_spill]]  ;;  %v3404_v0 = vld [vmem:[%s4535_s24 + $0x8] sm:$0xff]   ;;  %v3406_v2 = vld [vmem:[%s4535_s24 + $0x10] sm:$0xff]  }
 0x199   : > { %3121 = vmatprep.subr.bf16.mxu0 %v3885_v17  ;;  %v4598_v27 = vld [vmem:[%s4520_s11] sm:$0x7]  ;;  %s5018_s12 = sld [smem:[#allocation42_spill]]  ;;  %vm1993_vm4 = vcmask 48128  }
 0x19a   : > { %v1391_v25 = vsub.s32 0, %v4591_v24  ;;  %v2982_v38 = vld [vmem:[%s5016_s1] ss:$0 sm:$0xff]  ;;  %v3399_v59 = vld [vmem:[%s4561_s30 + $0x8] sm:$0xff]  }
 0x19b   : > { %v2987_v45 = vld [vmem:[%s1122_s18] ss:$0 sm:$0xff] }
 0x19c   : > { %3122 = vmatpush3.bf16.msra.mxu0 %v3393_v18  ;;  %v1392_v28 = vrot.slane %v4595_v26, %v1391_v25  ;;  %v1397_v31 = vrot.slane %v4598_v27, %v1391_v25  ;;  %v3398_v58 = vld [vmem:[%s4561_s30] sm:$0xff]  }
 0x19d   : > { %3123 = vmatprep.subr.bf16.mxu0 %v3885_v17  ;;  %v3395_v34 = vld [vmem:[%s5015_s3] sm:$0xff]   ;;  %v3396_v36 = vld [vmem:[%s5015_s3 + $0x8] sm:$0xff]   ;;  %v3397_v37 = vld [vmem:[%s5015_s3 + $0x10] sm:$0xff]   ;;  %3149 = vmatprep.subr.bf16.mxu1 %v3398_v58 }
 0x19e   : > { %3150 = vmatpush3.bf16.msra.mxu1 %v3398_v58  ;;  %v3401_v61 = vld [vmem:[%s5017_s28] sm:$0xff]   ;;  %v4631_v63 = vld [vmem:[%s5017_s28 + $0x8] sm:$0xff]   ;;  %v4639_v1 = vld [vmem:[%s5017_s28 + $0x10] sm:$0xff]  }
 0x19f   : > { %3151 = vmatprep.subr.bf16.mxu1 %v3399_v59  ;;  %v3402_v62 = vld [vmem:[%s4535_s24] sm:$0xff]   ;;  %3155 = vmatprep.mubr.msk.bf16.mxu1 %vm1374_vm1, %v3401_v61  ;;  %v4643_v3 = vld [vmem:[%s5017_s28 + $0x18] sm:$0xff]   ;;  %v3409_v5 = vld [vmem:[%s5018_s12 + $0x8] sm:$0xff]  }
 0x1a0   : > { %3124 = vmatpush3.bf16.msra.mxu0 %v3394_v19  ;;  %v3408_v4 = vld [vmem:[%s5018_s12] sm:$0xff]   ;;  %v3411_v58 = vld [vmem:[%s4564_s27] sm:$0xff]  }
 0x1a1   : > { %3129 = vmatprep.subr.bf16.mxu0 %v3885_v17 }
 0x1a2   : > { %3152 = vmatpush3.bf16.msra.mxu1 %v3399_v59  ;;  %v3412_v59 = vld [vmem:[%s4564_s27 + $0x8] sm:$0xff]  }
 0x1a3   : > { %3153 = vmatprep.subr.bf16.mxu1 %v3400_v60 }
 0x1a6   : > { %3154 = vmatpush3.bf16.msra.mxu1 %v3400_v60  ;;  %v3413_v60 = vld [vmem:[%s4564_s27 + $0x10] sm:$0xff]  }
 0x1a7   : > { %3177 = vmatprep.subr.bf16.mxu1 %v3408_v4 }
 0x1a9   : > { %3156 = vmatmul.mubr.msk.bf16.vlgmr.msra.gmra.mrb[0].mxu1 %vm1374_vm1, %v4631_v63 }
 0x1aa   : > { %3159 = vmatprep.mubr.msk.bf16.mxu1 %vm1374_vm1, %v4639_v1  ;;  %3178 = vmatpush3.bf16.msra.mxu1 %v3408_v4 }
 0x1ab   : > { %3179 = vmatprep.subr.bf16.mxu1 %v3409_v5 }
 0x1ae   : > { %3180 = vmatpush3.bf16.msra.mxu1 %v3409_v5 }
 0x1b1   : > { %3160 = vmatmul.mubr.msk.bf16.gmra.mrb[4].mxu1 %vm1374_vm1, %v4643_v3 }
 0x225   : > { %v1377_v11 = vpop.xlane.xlu0 %1376 }
 0x226   : > { %v1379_v12 = vmul.f32 0.020833334, %v1377_v11 }
 0x228   : > { %v1380_v13 = vsub.f32 %v4576_v9, %v1379_v12 }
 0x22a   : > { %v1381_v14 = vmul.f32 %v1380_v13, %v1380_v13 }
 0x22c   : > { %v1382_v15 = vsel %vm1374_vm1, %v1381_v14, 0.0 }
 0x22d   : > { %1383 = vadd.xlane.f32.xlu0 %v1382_v15 }
 0x27c   : > { %v3157_v18 = vpop.f32.mrb[0].mxu1 }
 0x27d   : > { %v1753_v19 = vpop.f32.mrb[1].mxu1 }
 0x2ba   : > { %v1384_v20 = vpop.xlane.xlu0 %1383 }
 0x2bb   : > { %v1385_v21 = vmul.f32 0.020833334, %v1384_v20  ;;  %v3158_v20 = vpop.f32.mrb[2].mxu1 }
 0x2bd   : > { %v1386_v23 = vadd.f32 1e-05, %v1385_v21  ;;  %v1756_v21 = vpop.f32.mrb[3].mxu1 }
 0x2be   : > { %v3161_v22 = vpop.f32.mrb[4].mxu1 }
 0x2bf   : > { %3428 = vrsqrt.f32 %v1386_v23  ;;  %v1769_v23 = vpop.f32.mrb[5].mxu1 }
 0x2c0   : > { %v3162_v25 = vpop.f32.mrb[6].mxu1 }
 0x2c9   : > { %v3429_v29 = vpop.eup %3428 }
 0x2ca   : > { %v1388_v30 = vmul.f32 %v3429_v29, %v1380_v13  ;;  %v3410_v29 = vld [vmem:[%s5018_s12 + $0x10] sm:$0xff]  }
 0x2cb   : > { %3181 = vmatprep.subr.bf16.mxu1 %v3410_v29 }
 0x2cc   : > { %v1393_v32 = vmul.f32 %v1392_v28, %v1388_v30  ;;  %v1772_v28 = vpop.f32.mrb[7].mxu1  ;;  %3182 = vmatpush3.bf16.msra.mxu1 %v3410_v29  ;;  %v2997_v30 = vld [vmem:[%s1147_s9] ss:$0 sm:$0xff] }
 0x2cd   : > { %3201 = vmatprep.subr.bf16.mxu1 %v3885_v17 }
 0x2ce   : > { %v1398_v33 = vadd.f32 %v1397_v31, %v1393_v32  ;;  %v2992_v31 = vld [vmem:[%s1130_s15] ss:$0 sm:$0xff]  ;;  %v1770_v32 = vadd.f32 %v2997_v30, %v1769_v23 }
 0x2d0   : > { %v1399_v35 = vpack.c.bf16 %v1398_v33, %v1398_v33  ;;  %v1773_v33 = vadd.f32 %v2997_v30, %v1772_v28 }
 0x2d2   : > { %3126 = vmatmul.mubr.msk.bf16.vlgmr.msra.gmra.mrb[0].mxu0 %vm1374_vm1, %v1399_v35  ;;  %v1781_v35 = vadd.f32 %v3162_v25, %v2997_v30 }
 0x2d3   : > { %3130 = vmatpush3.bf16.msra.mxu0 %v3395_v34  ;;  %3135 = vmatprep.mubr.msk.bf16.mxu0 %vm3886_vm2, %v3885_v17  ;;  %v1778_v34 = vadd.f32 %v3161_v22, %v2997_v30 }
 0x2d4   : > { %3131 = vmatprep.subr.bf16.mxu0 %v3885_v17 }
 0x2d7   : > { %3132 = vmatpush3.bf16.msra.mxu0 %v3396_v36 }
 0x2d8   : > { %3133 = vmatprep.subr.bf16.mxu0 %v3885_v17 }
 0x2db   : > { %3134 = vmatpush3.bf16.msra.mxu0 %v3397_v37  ;;  %v1754_v37 = vadd.f32 %v2997_v30, %v1753_v19 }
 0x2dc   : > { %3139 = vmatprep.subr.bf16.mxu0 %v3885_v17 }
 0x3a5   : > { %v1468_v39 = vpop.f32.mrb[0].mxu0 }
 0x3a6   : > { %v1469_v40 = vadd.f32 %v2982_v38, %v1468_v39  ;;  %v3127_v41 = vpop.f32.mrb[1].mxu0  ;;  %v1757_v38 = vadd.f32 %v2997_v30, %v1756_v21 }
 0x3a7   : > { %v1471_v42 = vpop.f32.mrb[2].mxu0  ;;  %v1762_v41 = vadd.f32 %v3157_v18, %v2997_v30 }
 0x3a8   : > { %v1474_v43 = vpack.c.bf16 %v1469_v40, %v1469_v40  ;;  %v3128_v44 = vpop.f32.mrb[3].mxu0  ;;  %v1765_v42 = vadd.f32 %v3158_v20, %v2997_v30 }
 0x3aa   : > { %3136 = vmatmul.mubr.msk.bf16.vlgmr.msra.gmra.mrb[4].mxu0 %vm1374_vm1, %v1474_v43 }
 0x3ab   : > { %3145 = vmatprep.mubr.msk.bf16.mxu0 %vm3886_vm2, %v3885_v17  ;;  %3140 = vmatpush3.bf16.msra.mxu0 %v3402_v62 }
 0x3ac   : > { %3141 = vmatprep.subr.bf16.mxu0 %v3885_v17 }
 0x3af   : > { %3142 = vmatpush3.bf16.msra.mxu0 %v3404_v0 }
 0x3b0   : > { %3143 = vmatprep.subr.bf16.mxu0 %v3885_v17 }
 0x3b3   : > { %3144 = vmatpush3.bf16.msra.mxu0 %v3406_v2 }
 0x3b4   : > { %3163 = vmatprep.subr.bf16.mxu0 %v3411_v58 }
 0x47d   : > { %v1543_v46 = vpop.f32.mrb[4].mxu0 }
 0x47e   : > { %v1544_v47 = vadd.f32 %v2987_v45, %v1543_v46  ;;  %v3137_v48 = vpop.f32.mrb[5].mxu0 }
 0x47f   : > { %v1546_v49 = vpop.f32.mrb[6].mxu0 }
 0x480   : > { %v4619_v50 = vadd.f32 %v1544_v47, %v4576_v9  ;;  %v3138_v51 = vpop.f32.mrb[7].mxu0  ;;  %v1565_v9 = vsub.s32 1, %v4591_v24 }
 0x482   : > { %v1550_v52 = vsel %vm1374_vm1, %v4619_v50, 0.0  ;;  %v1566_v10 = vrot.slane %v4595_v26, %v1565_v9  ;;  %v1571_v13 = vrot.slane %v4598_v27, %v1565_v9 }
 0x483   : > { %1551 = vadd.xlane.f32.xlu1 %v1550_v52 }
 0x510   : > { %v1552_v53 = vpop.xlane.xlu1 %1551 }
 0x511   : > { %v1553_v54 = vmul.f32 0.020833334, %v1552_v53 }
 0x513   : > { %v1554_v55 = vsub.f32 %v4619_v50, %v1553_v54 }
 0x515   : > { %v1555_v56 = vmul.f32 %v1554_v55, %v1554_v55 }
 0x517   : > { %v1556_v57 = vsel %vm1374_vm1, %v1555_v56, 0.0 }
 0x518   : > { %1557 = vadd.xlane.f32.xlu1 %v1556_v57 }
 0x5a5   : > { %v1558_v6 = vpop.xlane.xlu1 %1557 }
 0x5a6   : > { %v1559_v7 = vmul.f32 0.020833334, %v1558_v6 }
 0x5a8   : > { %v1560_v8 = vadd.f32 1e-05, %v1559_v7 }
 0x5aa   : > { %3430 = vrsqrt.f32 %v1560_v8 }
 0x5b4   : > { %v3431_v11 = vpop.eup %3430 }
 0x5b5   : > { %v1562_v12 = vmul.f32 %v3431_v11, %v1554_v55 }
 0x5b7   : > { %v1567_v14 = vmul.f32 %v1566_v10, %v1562_v12 }
 0x5b9   : > { %v1572_v15 = vadd.f32 %v1571_v13, %v1567_v14 }
 0x5bb   : > { %v1573_v16 = vpack.c.bf16 %v1572_v15, %v1572_v15 }
 0x5bd   : > { %3146 = vmatmul.mubr.msk.bf16.vlgmr.msra.gmra.mrb[8].mxu0 %vm1374_vm1, %v1573_v16 }
 0x5be   : > { %3169 = vmatprep.mubr.msk.bf16.mxu0 %vm1374_vm1, %v3401_v61  ;;  %3164 = vmatpush3.bf16.msra.mxu0 %v3411_v58  ;;  %v2061_v61 = vld [vmem:[#allocation7] sm:$0x7] }
 0x5bf   : > { %3165 = vmatprep.subr.bf16.mxu0 %v3412_v59  ;;  %v2076_v62 = vsel %vm2074_vm3, %v2061_v61, 0 }
 0x5c2   : > { %3166 = vmatpush3.bf16.msra.mxu0 %v3412_v59 }
 0x5c3   : > { %3167 = vmatprep.subr.bf16.mxu0 %v3413_v60 }
 0x5c6   : > { %3168 = vmatpush3.bf16.msra.mxu0 %v3413_v60 }
 0x5c7   : > { %3251 = vmatprep.subr.msk.bf16.mxu0 %vm2074_vm3, %v2061_v61 }
 0x5c9   : > { %3170 = vmatmul.mubr.msk.bf16.vlgmr.msra.gmra.mrb[12].mxu0 %vm1374_vm1, %v4631_v63 }
 0x5ca   : > { %3192 = vmatpush3.bf16.msra.mxu0 %v2076_v62  ;;  %3173 = vmatprep.mubr.msk.bf16.mxu0 %vm1374_vm1, %v4639_v1 }
 0x5cb   : > { %3211 = vmatprep.subr.bf16.mxu0 %v3885_v17 }
 0x5d1   : > { %3174 = vmatmul.mubr.msk.bf16.gmra.mrb[16].mxu0 %vm1374_vm1, %v4643_v3 }
 0x690   : > { %v1642_v36 = vpop.f32.mrb[8].mxu0 }
 0x691   : > { %v1643_v39 = vadd.f32 %v2992_v31, %v1642_v36  ;;  %v3147_v40 = vpop.f32.mrb[9].mxu0 }
 0x692   : > { %v1645_v43 = vpop.f32.mrb[10].mxu0 }
 0x693   : > { %v1884_v44 = vmul.f32 %v1770_v32, %v1643_v39  ;;  %v1885_v45 = vmul.f32 %v1773_v33, %v1643_v39  ;;  %v3148_v46 = vpop.f32.mrb[11].mxu0  ;;  %v1880_v47 = vmul.f32 %v1754_v37, %v1643_v39  ;;  %v1881_v48 = vmul.f32 %v1757_v38, %v1643_v39 }
 0x694   : > { %v1882_v49 = vmul.f32 %v1762_v41, %v1643_v39  ;;  %v1883_v51 = vmul.f32 %v1765_v42, %v1643_v39  ;;  %v1886_v52 = vmul.f32 %v1778_v34, %v1643_v39  ;;  %v1887_v53 = vmul.f32 %v1781_v35, %v1643_v39 }
 0x695   : > { %v1890_v54 = vpack.c.bf16 %v1885_v45, %v1884_v44  ;;  %v1888_v55 = vpack.c.bf16 %v1881_v48, %v1880_v47 }
 0x696   : > { %v1889_v56 = vpack.c.bf16 %v1883_v51, %v1882_v49  ;;  %v1891_v57 = vpack.c.bf16 %v1887_v53, %v1886_v52 }
 0x697   : > { %3183 = vmatprep.mubr.msk.bf16.mxu1 %vm1374_vm1, %v1888_v55 }
 0x698   : > { %3184 = vmatmul.mubr.msk.bf16.vlgmr.msra.gmra.mrb[8].mxu1 %vm1374_vm1, %v1889_v56 }
 0x699   : > { %3187 = vmatprep.mubr.msk.bf16.mxu1 %vm1374_vm1, %v1890_v54 }
 0x6a0   : > { %3188 = vmatmul.mubr.msk.bf16.gmra.mrb[12].mxu1 %vm1374_vm1, %v1891_v57 }
 0x6a1   : > { %3207 = vmatprep.mubr.msk.bf16.mxu1 %vm3886_vm2, %v3885_v17 }
 0x76b   : > { %v3185_v0 = vpop.f32.mrb[8].mxu1 }
 0x76c   : > { %v1962_v2 = vpop.f32.mrb[9].mxu1  ;;  %v1996_v7 = vsel %vm1993_vm4, %v3185_v0, -inf }
 0x76d   : > { %v3186_v4 = vpop.f32.mrb[10].mxu1  ;;  %v1994_v9 = vsel %vm1993_vm4, %v1962_v2, -inf }
 0x76e   : > { %v1965_v5 = vpop.f32.mrb[11].mxu1  ;;  %v1997_v12 = vsel %vm1993_vm4, %v3186_v4, -inf }
 0x76f   : > { %v1995_v15 = vsel %vm1993_vm4, %v1965_v5, -inf }
 0x773   : > { %v3189_v6 = vpop.f32.mrb[12].mxu1 }
 0x774   : > { %v2002_v8 = vsel %vm1993_vm4, %v3189_v6, -inf  ;;  %v1978_v63 = vpop.f32.mrb[13].mxu1 }
 0x775   : > { %v2003_v10 = vmax.f32 %v1996_v7, %v2002_v8  ;;  %v1998_v1 = vsel %vm1993_vm4, %v1978_v63, -inf  ;;  %v3190_v11 = vpop.f32.mrb[14].mxu1 }
 0x776   : > { %v1999_v3 = vmax.f32 %v1994_v9, %v1998_v1  ;;  %v2004_v13 = vsel %vm1993_vm4, %v3190_v11, -inf  ;;  %v1981_v14 = vpop.f32.mrb[15].mxu1 }
 0x777   : > { %v2005_v16 = vmax.f32 %v1997_v12, %v2004_v13  ;;  %v2000_v18 = vsel %vm1993_vm4, %v1981_v14, -inf }
 0x778   : > { %v2001_v19 = vmax.f32 %v1995_v15, %v2000_v18  ;;  %v3171_v15 = vpop.f32.mrb[12].mxu0 }
 0x779   : > { %v2007_v20 = vmax.f32 %v2003_v10, %v2005_v16  ;;  %v1849_v16 = vpop.f32.mrb[13].mxu0 }
 0x77a   : > { %v2006_v21 = vmax.f32 %v1999_v3, %v2001_v19  ;;  %v3172_v18 = vpop.f32.mrb[14].mxu0 }
 0x77b   : > { %v1852_v19 = vpop.f32.mrb[15].mxu0 }
 0x77c   : > { %v2008_v22 = vmax.f32 %v2006_v21, %v2007_v20  ;;  %v3175_v20 = vpop.f32.mrb[16].mxu0 }
 0x77d   : > { %v1865_v21 = vpop.f32.mrb[17].mxu0 }
 0x77e   : > { %v2009_v23 = vsub.f32 %v1962_v2, %v2008_v22  ;;  %v2010_v25 = vsub.f32 %v1965_v5, %v2008_v22  ;;  %v2011_v28 = vsub.f32 %v3185_v0, %v2008_v22  ;;  %v2012_v29 = vsub.f32 %v3186_v4, %v2008_v22 }
 0x77f   : > { %v2013_v30 = vsub.f32 %v1978_v63, %v2008_v22  ;;  %v2014_v31 = vsub.f32 %v1981_v14, %v2008_v22  ;;  %v2015_v32 = vsub.f32 %v3189_v6, %v2008_v22  ;;  %v2016_v33 = vsub.f32 %v3190_v11, %v2008_v22  ;;  %v3176_v22 = vpop.f32.mrb[18].mxu0 }
 0x780   : > { %v2017_v34 = vmul.f32 1.442695, %v2009_v23  ;;  %v2019_v35 = vmul.f32 1.442695, %v2010_v25  ;;  %v2021_v36 = vmul.f32 1.442695, %v2011_v28 }
 0x781   : > { %v2023_v37 = vmul.f32 1.442695, %v2012_v29  ;;  %v2025_v38 = vmul.f32 1.442695, %v2013_v30  ;;  %v2027_v39 = vmul.f32 1.442695, %v2014_v31 }
 0x782   : > { %3432 = vpow2.f32 %v2017_v34  ;;  %v2029_v40 = vmul.f32 1.442695, %v2015_v32  ;;  %v2031_v41 = vmul.f32 1.442695, %v2016_v33  ;;  %v1868_v23 = vpop.f32.mrb[19].mxu0  ;;  %v3414_v25 = vld [vmem:[%s4566_s2] sm:$0xff]  }
 0x783   : > { %3434 = vpow2.f32 %v2019_v35  ;;  %3202 = vmatpush3.bf16.msra.mxu1 %v3414_v25  ;;  %v3415_v28 = vld [vmem:[%s4566_s2 + $0x8] sm:$0xff]   ;;  %v3416_v29 = vld [vmem:[%s4566_s2 + $0x10] sm:$0xff]   ;;  %v3009_v30 = vld [vmem:[%s1348_s26] ss:$0 sm:$0xff] }
 0x784   : > { %3436 = vpow2.f32 %v2021_v36  ;;  %3203 = vmatprep.subr.bf16.mxu1 %v3885_v17  ;;  %v1858_v31 = vadd.f32 %v3171_v15, %v3009_v30  ;;  %v1850_v32 = vadd.f32 %v3009_v30, %v1849_v16  ;;  %v1861_v34 = vadd.f32 %v3172_v18, %v3009_v30  ;;  %v3420_v25 = vld [vmem:[%s4557_s0] sm:$0xff]  }
 0x785   : > { %3438 = vpow2.f32 %v2023_v37  ;;  %v1853_v37 = vadd.f32 %v3009_v30, %v1852_v19 }
 0x786   : > { %3440 = vpow2.f32 %v2025_v38 }
 0x787   : > { %3442 = vpow2.f32 %v2027_v39  ;;  %3204 = vmatpush3.bf16.msra.mxu1 %v3415_v28  ;;  %v3421_v28 = vld [vmem:[%s4557_s0 + $0x8] sm:$0xff]  }
 0x788   : > { %3444 = vpow2.f32 %v2029_v40  ;;  %3205 = vmatprep.subr.bf16.mxu1 %v3885_v17 }
 0x789   : > { %3446 = vpow2.f32 %v2031_v41 }
 0x78b   : > { %3206 = vmatpush3.bf16.msra.mxu1 %v3416_v29  ;;  %v3422_v29 = vld [vmem:[%s4557_s0 + $0x10] sm:$0xff]  }
 0x78c   : > { %v3433_v42 = vpop.eup %3432  ;;  %3221 = vmatprep.subr.bf16.mxu1 %v3885_v17 }
 0x78d   : > { %v3435_v43 = vpop.eup %3434  ;;  %v2033_v44 = vsel %vm1993_vm4, %v3433_v42, 0.0 }
 0x78e   : > { %v3437_v45 = vpop.eup %3436  ;;  %v2034_v46 = vsel %vm1993_vm4, %v3435_v43, 0.0 }
 0x78f   : > { %v3439_v47 = vpop.eup %3438  ;;  %v2035_v48 = vadd.f32 %v2034_v46, %v2033_v44  ;;  %v2036_v49 = vsel %vm1993_vm4, %v3437_v45, 0.0 }
 0x790   : > { %v3441_v51 = vpop.eup %3440  ;;  %v2038_v53 = vsel %vm1993_vm4, %v3439_v47, 0.0 }
 0x791   : > { %v2037_v52 = vadd.f32 %v2036_v49, %v2035_v48  ;;  %v3443_v54 = vpop.eup %3442  ;;  %v2040_v56 = vsel %vm1993_vm4, %v3441_v51, 0.0 }
 0x792   : > { %v3445_v57 = vpop.eup %3444  ;;  %v2042_v59 = vsel %vm1993_vm4, %v3443_v54, 0.0 }
 0x793   : > { %v2039_v55 = vadd.f32 %v2038_v53, %v2037_v52  ;;  %v3447_v60 = vpop.eup %3446  ;;  %v2044_v62 = vsel %vm1993_vm4, %v3445_v57, 0.0 }
 0x794   : > { %v2046_v2 = vsel %vm1993_vm4, %v3447_v60, 0.0 }
 0x795   : > { %v2041_v58 = vadd.f32 %v2040_v56, %v2039_v55  ;;  %v1869_v55 = vadd.f32 %v3009_v30, %v1868_v23  ;;  %v3419_v23 = vld [vmem:[%s4568_s7 + $0x10] sm:$0xff]  }
 0x797   : > { %v2043_v61 = vadd.f32 %v2042_v59, %v2041_v58 }
 0x799   : > { %v2045_v0 = vadd.f32 %v2044_v62, %v2043_v61 }
 0x79b   : > { %v2047_v4 = vadd.f32 %v2046_v2, %v2045_v0 }
 0x79d   : > { %3448 = vrcp.f32 %v2047_v4 }
 0x7a7   : > { %v3449_v5 = vpop.eup %3448 }
 0x7a8   : > { %v2049_v6 = vmul.f32 %v3449_v5, %v3433_v42  ;;  %v2050_v7 = vmul.f32 %v3449_v5, %v3435_v43  ;;  %v2051_v8 = vmul.f32 %v3449_v5, %v3437_v45  ;;  %v2052_v63 = vmul.f32 %v3449_v5, %v3439_v47 }
 0x7a9   : > { %v2053_v9 = vmul.f32 %v3449_v5, %v3441_v51  ;;  %v2054_v10 = vmul.f32 %v3449_v5, %v3443_v54  ;;  %v2055_v1 = vmul.f32 %v3449_v5, %v3445_v57  ;;  %v2056_v11 = vmul.f32 %v3449_v5, %v3447_v60 }
 0x7aa   : > { %v2057_v12 = vpack.c.bf16 %v2050_v7, %v2049_v6  ;;  %v2058_v3 = vpack.c.bf16 %v2052_v63, %v2051_v8  ;;  %v1874_v45 = vadd.f32 %v3175_v20, %v3009_v30  ;;  %v1866_v47 = vadd.f32 %v3009_v30, %v1865_v21 }
 0x7ab   : > { %v2059_v13 = vpack.c.bf16 %v2054_v10, %v2053_v9  ;;  %v2060_v14 = vpack.c.bf16 %v2056_v11, %v2055_v1  ;;  %v1877_v51 = vadd.f32 %v3176_v22, %v3009_v30  ;;  %v3028_v10 = vld [vmem:[%s1351_s4] ss:$0 sm:$0xff]  ;;  %v3417_v22 = vld [vmem:[%s4568_s7] sm:$0xff]  }
 0x7ac   : > { %3193 = vmatprep.mubr.msk.bf16.mxu0 %vm1993_vm4, %v2057_v12  ;;  %v3423_v30 = vld [vmem:[%s4557_s0 + $0x18] sm:$0xff]  }
 0x7ad   : > { %3194 = vmatmul.mubr.msk.bf16.vlgmr.msra.gmra.mrb[20].mxu0 %vm1993_vm4, %v2058_v3 }
 0x7ae   : > { %3197 = vmatprep.mubr.msk.bf16.mxu0 %vm1993_vm4, %v2059_v13  ;;  %3212 = vmatpush3.bf16.msra.mxu0 %v3417_v22 }
 0x7af   : > { %3213 = vmatprep.subr.bf16.mxu0 %v3885_v17 }
 0x7b5   : > { %3198 = vmatmul.mubr.msk.bf16.gmra.mrb[24].mxu0 %vm1993_vm4, %v2060_v14 }
 0x7b6   : > { %3217 = vmatprep.mubr.msk.bf16.mxu0 %vm3886_vm2, %v3885_v17 }
 0x880   : > { %v3195_v33 = vpop.f32.mrb[20].mxu0 }
 0x881   : > { %v2145_v35 = vmul.f32 %v3195_v33, %v1858_v31  ;;  %v2112_v36 = vpop.f32.mrb[21].mxu0  ;;  %v3424_v31 = vld [vmem:[%s4557_s0 + $0x20] sm:$0xff]  }
 0x882   : > { %v2143_v38 = vmul.f32 %v2112_v36, %v1850_v32  ;;  %v3196_v39 = vpop.f32.mrb[22].mxu0  ;;  %v3425_v32 = vld [vmem:[%s4557_s0 + $0x28] sm:$0xff]   ;;  %v2257_v36 = vsub.s32 2, %v4591_v24  ;;  %v3033_v24 = vld [vmem:[%s1354_s21] ss:$0 sm:$0xff]  ;;  %s5023_s21 = sld [smem:[#allocation27_spill]] }
 0x883   : > { %v2146_v40 = vmul.f32 %v3196_v39, %v1861_v34  ;;  %v2115_v41 = vpop.f32.mrb[23].mxu0  ;;  %v2154_v48 = vsel %vm1374_vm1, %v2145_v35, 0.0 }
 0x884   : > { %v2144_v42 = vmul.f32 %v2115_v41, %v1853_v37  ;;  %v2151_v43 = vsel %vm1374_vm1, %v2143_v38, 0.0  ;;  %v2258_v37 = vrot.slane %v4595_v26, %v2257_v36  ;;  %v2263_v39 = vrot.slane %v4598_v27, %v2257_v36 }
 0x885   : > { %v2156_v56 = vsel %vm1374_vm1, %v2146_v40, 0.0 }
 0x886   : > { %v2152_v44 = vsel %vm1374_vm1, %v2144_v42, 0.0 }
 0x887   : > { %v2153_v46 = vadd.f32 %v2152_v44, %v2151_v43  ;;  %v3426_v44 = vld [vmem:[%s4557_s0 + $0x30] sm:$0xff]  }
 0x888   : > { %v3199_v49 = vpop.f32.mrb[24].mxu0  ;;  %p3047_p5 = scmp.ne.s32.totalorder %s5023_s21, 1 }
 0x889   : > { %v2155_v52 = vadd.f32 %v2154_v48, %v2153_v46  ;;  %v2149_v53 = vmul.f32 %v3199_v49, %v1874_v45  ;;  %v2128_v54 = vpop.f32.mrb[25].mxu0  ;;  %v3427_v45 = vld [vmem:[%s4557_s0 + $0x38] sm:$0xff]   ;;  %s5024_s0 = sld [smem:[#allocation64_spill]] (!%p3047_p5)  ;;  %vm3888_vm5 = vmmov (!%p3047_p5), 0   ;;  %s5026_s10 = sld [smem:[#allocation62_spill]] (!%p3047_p5) }
 0x88a   : > { %v2147_v57 = vmul.f32 %v2128_v54, %v1866_v47  ;;  %v3200_v58 = vpop.f32.mrb[26].mxu0  ;;  %s5027_s24 = sld [smem:[#allocation63_spill]] (!%p3047_p5)  ;;  %s5028_s13 = sld [smem:[#allocation65_spill]] (!%p3047_p5) }
 0x88b   : > { %v2157_v59 = vadd.f32 %v2156_v56, %v2155_v52  ;;  %v2150_v60 = vmul.f32 %v3200_v58, %v1877_v51  ;;  %v2131_v61 = vpop.f32.mrb[27].mxu0  ;;  %v2162_v6 = vsel %vm1374_vm1, %v2149_v53, 0.0  ;;  %v3038_v52 = vld [vmem:[%s1362_s14] ss:$0 sm:$0xff] }
 0x88c   : > { %v2158_v62 = vsel %vm1374_vm1, %v2147_v57, 0.0  ;;  %v2148_v0 = vmul.f32 %v2131_v61, %v1869_v55 }
 0x88d   : > { %v2159_v2 = vadd.f32 %v2158_v62, %v2157_v59  ;;  %v2164_v8 = vsel %vm1374_vm1, %v2150_v60, 0.0 }
 0x88e   : > { %v2160_v4 = vsel %vm1374_vm1, %v2148_v0, 0.0 }
 0x88f   : > { %v2161_v5 = vadd.f32 %v2160_v4, %v2159_v2  ;;  %s5025_s1 = smov (!%p3047_p5), %s5024_s0  ;;  %v3452_v2 = vld [vmem:[%s5024_s0] sm:$0xff] (!%p3047_p5)   ;;  %v3887_v4 = vmov (!%p3047_p5), 0.0  }
 0x891   : > { %v2163_v7 = vadd.f32 %v2162_v6, %v2161_v5  ;;  %v3453_v5 = vld [vmem:[%s5025_s1 + $0x8] sm:$0xff] (!%p3047_p5)   ;;  %v3454_v6 = vld [vmem:[%s5025_s1 + $0x10] sm:$0xff] (!%p3047_p5)  }
 0x893   : > { %v2165_v63 = vadd.f32 %v2164_v8, %v2163_v7 }
 0x895   : > { %v2166_v9 = vpack.c.bf16 %v2165_v63, %v2165_v63 }
 0x897   : > { %3208 = vmatmul.mubr.msk.bf16.vlgmr.msra.gmra.mrb[16].mxu1 %vm1374_vm1, %v2166_v9 }
 0x898   : > { %3237 = vmatprep.mubr.msk.bf16.mxu1 %vm3886_vm2, %v3885_v17  ;;  %3222 = vmatpush3.bf16.msra.mxu1 %v3420_v25 }
 0x899   : > { %3223 = vmatprep.subr.bf16.mxu1 %v3885_v17 }
 0x89c   : > { %3224 = vmatpush3.bf16.msra.mxu1 %v3421_v28 }
 0x89d   : > { %3225 = vmatprep.subr.bf16.mxu1 %v3885_v17 }
 0x8a0   : > { %3226 = vmatpush3.bf16.msra.mxu1 %v3422_v29 }
 0x8a1   : > { %3227 = vmatprep.subr.bf16.mxu1 %v3885_v17 }
 0x8a4   : > { %3228 = vmatpush3.bf16.msra.mxu1 %v3423_v30 }
 0x8a5   : > { %3229 = vmatprep.subr.bf16.mxu1 %v3885_v17 }
 0x8a8   : > { %3230 = vmatpush3.bf16.msra.mxu1 %v3424_v31 }
 0x8a9   : > { %3231 = vmatprep.subr.bf16.mxu1 %v3885_v17 }
 0x8ac   : > { %3232 = vmatpush3.bf16.msra.mxu1 %v3425_v32 }
 0x8ad   : > { %3233 = vmatprep.subr.bf16.mxu1 %v3885_v17 }
 0x8b0   : > { %3234 = vmatpush3.bf16.msra.mxu1 %v3426_v44 }
 0x8b1   : > { %3235 = vmatprep.subr.bf16.mxu1 %v3885_v17 }
 0x8b4   : > { %3236 = vmatpush3.bf16.msra.mxu1 %v3427_v45 }
 0x96a   : > { %v2235_v1 = vpop.f32.mrb[16].mxu1 }
 0x96b   : > { %v2236_v11 = vadd.f32 %v3028_v10, %v2235_v1  ;;  %v3209_v12 = vpop.f32.mrb[17].mxu1  ;;  %v3048_v10 = vld [vmem:[%s5026_s10] ss:$0 sm:$0xff] (!%p3047_p5) }
 0x96c   : > { %v2238_v3 = vpop.f32.mrb[18].mxu1 }
 0x96d   : > { %v4735_v13 = vadd.f32 %v2236_v11, %v4619_v50  ;;  %v3210_v14 = vpop.f32.mrb[19].mxu1  ;;  %v3418_v50 = vld [vmem:[%s4568_s7 + $0x8] sm:$0xff]  }
 0x96e   : > { %3214 = vmatpush3.bf16.msra.mxu0 %v3418_v50  ;;  %v3049_v11 = vld [vmem:[%s5027_s24] ss:$0 sm:$0xff] (!%p3047_p5) }
 0x96f   : > { %v2242_v15 = vsel %vm1374_vm1, %v4735_v13, 0.0  ;;  %3215 = vmatprep.subr.bf16.mxu0 %v3885_v17  ;;  %v3050_v14 = vld [vmem:[%s5028_s13] ss:$0 sm:$0xff] (!%p3047_p5) }
 0x970   : > { %2243 = vadd.xlane.f32.xlu0 %v2242_v15 }
 0x972   : > { %3216 = vmatpush3.bf16.msra.mxu0 %v3419_v23 }
 0x973   : > { %3241 = vmatprep.subr.bf16.mxu0 (!%p3047_p5), %v3887_v4 }
 0x9fd   : > { %v2244_v16 = vpop.xlane.xlu0 %2243 }
 0x9fe   : > { %v2245_v18 = vmul.f32 0.020833334, %v2244_v16 }
 0xa00   : > { %v2246_v19 = vsub.f32 %v4735_v13, %v2245_v18 }
 0xa02   : > { %v2247_v20 = vmul.f32 %v2246_v19, %v2246_v19 }
 0xa04   : > { %v2248_v21 = vsel %vm1374_vm1, %v2247_v20, 0.0 }
 0xa05   : > { %2249 = vadd.xlane.f32.xlu1 %v2248_v21 }
 0xa92   : > { %v2250_v33 = vpop.xlane.xlu1 %2249 }
 0xa93   : > { %v2251_v34 = vmul.f32 0.020833334, %v2250_v33 }
 0xa95   : > { %v2252_v35 = vadd.f32 1e-05, %v2251_v34 }
 0xa97   : > { %3450 = vrsqrt.f32 %v2252_v35 }
 0xaa1   : > { %v3451_v38 = vpop.eup %3450 }
 0xaa2   : > { %v2254_v40 = vmul.f32 %v3451_v38, %v2246_v19 }
 0xaa4   : > { %v2259_v41 = vmul.f32 %v2258_v37, %v2254_v40 }
 0xaa6   : > { %v2264_v42 = vadd.f32 %v2263_v39, %v2259_v41 }
 0xaa8   : > { %v2265_v43 = vpack.c.bf16 %v2264_v42, %v2264_v42 }
 0xaaa   : > { %3218 = vmatmul.mubr.msk.bf16.vlgmr.msra.gmra.mrb[28].mxu0 %vm1374_vm1, %v2265_v43 }
 0xaab   : > { %3247 = vmatprep.mubr.msk.bf16.mxu0 (!%p3047_p5), %vm3888_vm5, %v3887_v4  ;;  %3242 = vmatpush3.bf16.msra.mxu0 (!%p3047_p5), %v3452_v2 }
 0xaac   : > { %3243 = vmatprep.subr.bf16.mxu0 (!%p3047_p5), %v3887_v4 }
 0xaaf   : > { %3244 = vmatpush3.bf16.msra.mxu0 (!%p3047_p5), %v3453_v5 }
 0xab0   : > { %3245 = vmatprep.subr.bf16.mxu0 (!%p3047_p5), %v3887_v4 }
 0xab3   : > { %3246 = vmatpush3.bf16.msra.mxu0 (!%p3047_p5), %v3454_v6 }
 0xb7d   : > { %v2334_v26 = vpop.f32.mrb[28].mxu0 }
 0xb7e   : > { %v2335_v27 = vadd.f32 %v3033_v24, %v2334_v26  ;;  %v3219_v46 = vpop.f32.mrb[29].mxu0 }
 0xb7f   : > { %v2337_v47 = vpop.f32.mrb[30].mxu0 }
 0xb80   : > { %v2340_v48 = vmax.f32 %v2335_v27, 0.0  ;;  %v3220_v49 = vpop.f32.mrb[31].mxu0 }
 0xb82   : > { %v2341_v51 = vpack.c.bf16 %v2340_v48, %v2340_v48 }
 0xb84   : > { %3238 = vmatmul.mubr.bf16.vlgmr.msra.gmra.mrb[20].mxu1 %v2341_v51 }
 0xc56   : > { %2458 = sbr.rel (%p3047_p5) target bundleno = 4006 (0xfa6), region = 213 }
 0xc57   : > { %v2447_v17 = vpop.f32.mrb[20].mxu1 }
 0xc58   : > { %v2448_v53 = vadd.f32 %v3038_v52, %v2447_v17  ;;  %v3239_v54 = vpop.f32.mrb[21].mxu1 }
 0xc59   : > { %v2450_v55 = vpop.f32.mrb[22].mxu1 }
 0xc5a   : > { %v2453_v56 = vadd.f32 %v2448_v53, %v4735_v13  ;;  %v3240_v57 = vpop.f32.mrb[23].mxu1 }
 0xc5c   : > { %2454 = vst.msk [vmem:[#allocation2] sm:$0xff] %vm1374_vm1, %v2453_v56  ;;  %v2461_v58 = vsel (!%p3047_p5), %vm1374_vm1, %v2453_v56, 0.0 }
 0xc5d   : > { %2462 = vadd.xlane.f32.xlu0 %v2461_v58 }
 0xcea   : > { %v2463_v59 = vpop.xlane.xlu0 %2462 }
 0xceb   : > { %v2464_v60 = vmul.f32 0.020833334, %v2463_v59 }
 0xced   : > { %v2465_v61 = vsub.f32 %v2453_v56, %v2464_v60 }
 0xcef   : > { %v2466_v62 = vmul.f32 %v2465_v61, %v2465_v61 }
 0xcf1   : > { %v2467_v0 = vsel %vm1374_vm1, %v2466_v62, 0.0 }
 0xcf2   : > { %2468 = vadd.xlane.f32.xlu0 %v2467_v0 }
 0xd7f   : > { %v2469_v7 = vpop.xlane.xlu0 %2468 }
 0xd80   : > { %v2470_v8 = vmul.f32 0.020833334, %v2469_v7 }
 0xd82   : > { %v2471_v63 = vadd.f32 1e-05, %v2470_v8 }
 0xd84   : > { %3455 = vrsqrt.f32 %v2471_v63 }
 0xd8e   : > { %v3456_v9 = vpop.eup %3455 }
 0xd8f   : > { %v2473_v1 = vmul.f32 %v3456_v9, %v2465_v61 }
 0xd91   : > { %v2480_v12 = vmul.f32 %v3048_v10, %v2473_v1 }
 0xd93   : > { %v2487_v3 = vadd.f32 %v3049_v11, %v2480_v12 }
 0xd95   : > { %v2488_v13 = vpack.c.bf16 %v2487_v3, %v2487_v3 }
 0xd97   : > { %3248 = vmatmul.mubr.msk.bf16.vlgmr.msra.gmra.mrb[0].mxu0 %vm1374_vm1, %v2488_v13 }
 0xe6a   : > { %v2557_v15 = vpop.f32.mrb[0].mxu0 }
 0xe6b   : > { %v2558_v16 = vadd.f32 %v3050_v14, %v2557_v15  ;;  %v3249_v18 = vpop.f32.mrb[1].mxu0 }
 0xe6c   : > { %v2560_v19 = vpop.f32.mrb[2].mxu0 }
 0xe6d   : > { %2563 = vmax.xlane.f32.xlu1 %v2558_v16  ;;  %v3250_v20 = vpop.f32.mrb[3].mxu0 }
 0xefa   : > { %v2564_v21 = vpop.xlane.xlu1 %2563 }
 0xefb   : > { %v2565_v22 = vsub.f32 %v2558_v16, %v2564_v21 }
 0xefd   : > { %v2566_v50 = vmul.f32 1.442695, %v2565_v22 }
 0xeff   : > { %3457 = vpow2.f32 %v2566_v50 }
 0xf09   : > { %v3458_v23 = vpop.eup %3457 }
 0xf0a   : > { %2568 = vadd.xlane.f32.xlu1 %v3458_v23 }
 0xf97   : > { %v2569_v25 = vpop.xlane.xlu1 %2568 }
 0xf98   : > { %3459 = vrcp.f32 %v2569_v25 }
 0xfa2   : > { %v3460_v28 = vpop.eup %3459 }
 0xfa3   : > { %v2571_v29 = vmul.f32 %v3460_v28, %v3458_v23 }
 0xfa5   : > { %2572 = vst [vmem:[%s4572_s6] sm:$0xff] %v2571_v29 }
 0xfa6 PF: > { %s5029_s16 = sld [smem:[#allocation28_spill]]  ;;  %s5030_s26 = sld [smem:[#allocation36_spill]] }
 0xfa7   : > { %s5031_s18 = sld [smem:[#allocation66_spill]]  ;;  %s2587_s30 = sshll.u32 %s4572_s6, 4  ;;  %s2588_s30 = int_to_ptr.vmem [resolvable:$true] %s2587_s30 }
 0xfa8   : > { %s2574_s9 = scalar_lea.sflag [#allocation5], %s4479_s29  ;;  %s3741_s27 = scalar_lea.vmem %s2588_s30, 128 }
 0xfa9   : > { %p3742_p11 = scmp.ne.s32.totalorder %s2588_s30, %s3741_s27  ;;  %s3889_s21 = smov [#allocation17]  }
 0xfaa   : > { %s3745_s14 = sshll.u32 %s3889_s21, 4  ;;  %s3746_s14 = int_to_ptr.vmem [resolvable:$false] %s3745_s14 }
 0xfab   : > { %s3747_s5 = scalar_lea.vmem %s3746_s14, 256  ;;  %p3748_p9 = scmp.lt.s32.totalorder %s2588_s30, %s3746_s14 }
 0xfac   : > { %s3056_s19 = sshll.u32 %s5029_s16, 7  ;;  %p5032_p0 = scmp.ne.s32.totalorder %s5030_s26, 0 }
 0xfad   : > { %s4804_s15 = scalar_lea.hbm %s5031_s18, %s3056_s19  ;;  %p3749_p2 = scmp.lt.s32.totalorder %s3747_s5, %s3741_s27 }
 0xfae   : > { %p3743_p1 = pnand %p3742_p11, %p5032_p0 }
 0xfaf   : > { %p3750_p3 = por %p3749_p2, %p3748_p9 }
 0xfb0   : > { %p3744_p8 = pneg %p3743_p1 }
 0xfb2   : > { %p3751_p12 = pnand %p3750_p3, %p3744_p8 }
 0xfb4   : > { %3754 = shalt.err (!%p3751_p12)
}
 0xfb5   : > { %s3755_s29 = scalar_lea.hbm %s4804_s15, 128  ;;  %s3759_s2 = scalar_lea.hbm %s5031_s18, 256 }
 0xfb6   : > { %p3756_p13 = scmp.ne.s32.totalorder %s4804_s15, %s3755_s29  ;;  %p3760_p10 = scmp.lt.u32.totalorder %s4804_s15, %s5031_s18 }
 0xfb7   : > { %p3761_p7 = scmp.lt.u32.totalorder %s3759_s2, %s3755_s29  ;;  %p3763_p11 = scmp.lt.u32.totalorder %s3755_s29, %s4804_s15 }
 0xfb8   : > { %p3757_p6 = pnand %p3756_p13, %p5032_p0 }
 0xfb9   : > { %p3762_p5 = por %p3761_p7, %p3760_p10 }
 0xfba   : > { %p3758_p4 = pneg %p3757_p6 }
 0xfbb   : > { %p3764_p1 = por %p3763_p11, %p3762_p5 }
 0xfbd   : > { %p3765_p8 = pnand %p3764_p1, %p3758_p4 }
 0xfbf   : > { %3768 = shalt.err (!%p3765_p8)
}
 0xfc0   : > { %3284 = dma.vmem_to_hbm [thread:$0]  (%p5032_p0), %s2588_s30, 128, %s4804_s15, %s2574_s9  }
 0xfc1 PF: > { %s5033_s3 = sld [smem:[#allocation31_spill]]  ;;  %s5034_s28 = sld [smem:[#allocation24_spill]] }
 0xfc2   : > { %s5035_s22 = sld [smem:[#allocation37_spill]] }
 0xfc7   : > { %p3296_p9 = scmp.ge.s32.totalorder %s5033_s3, 2  ;;  %s2599_s10 = sand.u32 1, %s5034_s28  }
 0xfc8   : > { %p5036_p2 = scmp.ne.s32.totalorder %s5035_s22, 0  ;;  %s2600_s11 = scalar_lea.sflag [#allocation5], %s2599_s10 }
 0xfca   : > { %p3291_p3 = pnand %p3296_p9, %p5036_p2 }
 0xfcc   : > { %3826 = dma.done.wait (!%p3291_p3), %s2600_s11, 128  }
 0xfcd   : > { %3828 = vsyncadd (!%p3291_p3), %s2600_s11, 4294967168  ;;  %s43_s2 = sadd.s32 1, %s5033_s3   ;;  %s5037_s27 = sld [smem:[#allocation22_spill]] }
 0xfce   : > { %p40_p12 = scmp.ge.s32.totalorder %s43_s2, 6   ;;  %s5038_s3 = sld [smem:[#allocation23_spill]] }
 0xfcf   : > { %s5039_s7 = sld [smem:[#allocation34_spill]]  ;;  %s5040_s28 = sld [smem:[#allocation25_spill]] }
 0xfd0   : > { %s5041_s8 = sld [smem:[#allocation26_spill]]  ;;  %s5042_s4 = sld [smem:[#allocation35_spill]] }
 0xfd1   : > { %s5043_s29 = sld [smem:[#allocation29_spill]]  ;;  %s5044_s0 = sld [smem:[#allocation30_spill]] }
 0xfd2   : > { %s5045_s9 = sld [smem:[#allocation32_spill]]  ;;  %s5046_s30 = sld [smem:[#allocation33_spill]] }
 0xfd3   :  { %42 = sbr.rel (!%p40_p12) target bundleno = 38 (0x26), region = 348 }
 0xfda   :  { %2605 = vsyncpa [#allocation4], 1 }
 0xfdb   :  { %2607 = vsyncpa [#allocation4 + $0x1], 1 }
 0xfdc   :  { %2608 = vsyncpa [#allocation8], 1 }
 0xfdd   :  { %2609 = vsyncpa [#allocation5], 1 }
 0xfde   :  { %2611 = vsyncpa [#allocation5 + $0x1], 1 }

</bundles_post_ra>
